<compile_context>
chip_gen: v7x
topology: tpu7x:2x2x1
jax: 0.10.0
libtpu: 0.0.40
codegen_flags: <defaults>
</compile_context>

<pallas_src>
import functools
import jax
import jax.numpy as jnp
from jax.experimental import pallas as pl
from jax.experimental.pallas import tpu as pltpu


# ----------------------------------------------------------------------------
# small helpers
# ----------------------------------------------------------------------------
def _round_up(x, m):
    return (x + m - 1) // m * m


def _choose_tm(M, max_tm=1024):
    """Largest row tile <= max_tm, multiple of 8, keeping >=2 grid steps when
    the problem is big enough so both TensorCores get work on v7x."""
    Mp8 = _round_up(M, 8)
    if Mp8 <= 16:
        return Mp8
    n_steps = max(2, -(-Mp8 // max_tm))
    return _round_up(-(-Mp8 // n_steps), 8)


def _mosaic_params(bytes_per_step):
    # cover double-buffered tiles explicitly; stay well under v7x's 64 MiB VMEM
    return pltpu.CompilerParams(
        dimension_semantics=("parallel",),
        vmem_limit_bytes=int(min(48 * 2**20, max(16 * 2**20, 4 * bytes_per_step))),
    )


def _pad_rows(x2d, Mp):
    M = x2d.shape[0]
    return x2d if Mp == M else jnp.pad(x2d, ((0, Mp - M), (0, 0)))


# ----------------------------------------------------------------------------
# Pallas kernels (matmul on MXU, f32 epilogue on VPU)
# ----------------------------------------------------------------------------
def _mm_bias_kernel(x_ref, w_ref, shift_ref, o_ref):
    y = jnp.dot(x_ref[...], w_ref[...], preferred_element_type=jnp.float32)
    o_ref[...] = (y + shift_ref[...]).astype(o_ref.dtype)


def _mm_bias_prelu_kernel(x_ref, w_ref, shift_ref, alpha_ref, o_ref):
    y = jnp.dot(x_ref[...], w_ref[...], preferred_element_type=jnp.float32)
    y = y + shift_ref[...]
    o_ref[...] = jnp.where(y >= 0.0, y, alpha_ref[...] * y).astype(o_ref.dtype)


def _dual_mm_kernel(x_ref, w0_ref, t0_ref, a0_ref, wc_ref, tc_ref, ac_ref,
                    b0_ref, res_ref):
    # block0 and conv_out projection share one activation tile read.
    x = x_ref[...]
    y0 = jnp.dot(x, w0_ref[...], preferred_element_type=jnp.float32) + t0_ref[...]
    b0_ref[...] = jnp.where(y0 >= 0.0, y0, a0_ref[...] * y0).astype(b0_ref.dtype)
    yc = jnp.dot(x, wc_ref[...], preferred_element_type=jnp.float32) + tc_ref[...]
    res_ref[...] = jnp.where(yc >= 0.0, yc, ac_ref[...] * yc).astype(res_ref.dtype)


def _mm_residual_kernel(x_ref, w_ref, shift_ref, alpha_ref, res_ref, aout_ref, o_ref):
    # block2 (1x1 conv + folded BN + PReLU) fused with residual add + PReLU_out.
    y = jnp.dot(x_ref[...], w_ref[...], preferred_element_type=jnp.float32) + shift_ref[...]
    y = jnp.where(y >= 0.0, y, alpha_ref[...] * y)
    y = y + res_ref[...].astype(jnp.float32)
    o_ref[...] = jnp.where(y >= 0.0, y, aout_ref[...] * y).astype(o_ref.dtype)


# ----------------------------------------------------------------------------
# pallas_call wrappers
# ----------------------------------------------------------------------------
def matmul_bias_act(x2d, w, shift, alpha=None, out_dtype=jnp.bfloat16, max_tm=1024):
    M, K = x2d.shape
    Kw, Nout = w.shape
    assert K == Kw
    tm = _choose_tm(M, max_tm)
    Mp = _round_up(M, tm)
    x2d = _pad_rows(x2d, Mp)

    in_specs = [
        pl.BlockSpec((tm, K), lambda i: (i, 0)),     # activations, row-tiled
        pl.BlockSpec((K, Nout), lambda i: (0, 0)),   # weights (BN scale folded), resident
        pl.BlockSpec((1, Nout), lambda i: (0, 0)),   # folded bias/shift
    ]
    inputs = [x2d, w, shift]
    if alpha is not None:
        in_specs.append(pl.BlockSpec((1, Nout), lambda i: (0, 0)))
        inputs.append(alpha)
    kernel = _mm_bias_kernel if alpha is None else _mm_bias_prelu_kernel

    bytes_per_step = 2 * (tm * K * 2 + tm * Nout * 4) + K * Nout * 2
    out = pl.pallas_call(
        kernel,
        out_shape=jax.ShapeDtypeStruct((Mp, Nout), out_dtype),
        grid_spec=pltpu.PrefetchScalarGridSpec(
            num_scalar_prefetch=0,
            grid=(Mp // tm,),
            in_specs=in_specs,
            out_specs=pl.BlockSpec((tm, Nout), lambda i: (i, 0)),
        ),
        compiler_params=_mosaic_params(bytes_per_step),
    )(*inputs)
    return out[:M]


def dual_pointwise_conv(x2d, w0, t0, a0, wc, tc, ac, out_dtype=jnp.bfloat16, max_tm=1024):
    M, K = x2d.shape
    N0, Nc = w0.shape[1], wc.shape[1]
    tm = _choose_tm(M, max_tm)
    Mp = _round_up(M, tm)
    x2d = _pad_rows(x2d, Mp)

    bytes_per_step = 2 * (tm * K * 2 + tm * (N0 + Nc) * 4) + K * (N0 + Nc) * 2
    b0, res = pl.pallas_call(
        _dual_mm_kernel,
        out_shape=(jax.ShapeDtypeStruct((Mp, N0), out_dtype),
                   jax.ShapeDtypeStruct((Mp, Nc), out_dtype)),
        grid_spec=pltpu.PrefetchScalarGridSpec(
            num_scalar_prefetch=0,
            grid=(Mp // tm,),
            in_specs=[
                pl.BlockSpec((tm, K), lambda i: (i, 0)),
                pl.BlockSpec((K, N0), lambda i: (0, 0)),
                pl.BlockSpec((1, N0), lambda i: (0, 0)),
                pl.BlockSpec((1, N0), lambda i: (0, 0)),
                pl.BlockSpec((K, Nc), lambda i: (0, 0)),
                pl.BlockSpec((1, Nc), lambda i: (0, 0)),
                pl.BlockSpec((1, Nc), lambda i: (0, 0)),
            ],
            out_specs=(pl.BlockSpec((tm, N0), lambda i: (i, 0)),
                       pl.BlockSpec((tm, Nc), lambda i: (i, 0))),
        ),
        compiler_params=_mosaic_params(bytes_per_step),
    )(x2d, w0, t0, a0, wc, tc, ac)
    return b0[:M], res[:M]


def pointwise_conv_residual(x2d, w, shift, alpha, res2d, alpha_out,
                            out_dtype=jnp.float32, max_tm=1024):
    M, K = x2d.shape
    Nout = w.shape[1]
    assert res2d.shape == (M, Nout)
    tm = _choose_tm(M, max_tm)
    Mp = _round_up(M, tm)
    x2d = _pad_rows(x2d, Mp)
    res2d = _pad_rows(res2d, Mp)

    bytes_per_step = 2 * (tm * K * 2 + tm * Nout * 2 + tm * Nout * 4) + K * Nout * 2
    out = pl.pallas_call(
        _mm_residual_kernel,
        out_shape=jax.ShapeDtypeStruct((Mp, Nout), out_dtype),
        grid_spec=pltpu.PrefetchScalarGridSpec(
            num_scalar_prefetch=0,
            grid=(Mp // tm,),
            in_specs=[
                pl.BlockSpec((tm, K), lambda i: (i, 0)),
                pl.BlockSpec((K, Nout), lambda i: (0, 0)),
                pl.BlockSpec((1, Nout), lambda i: (0, 0)),
                pl.BlockSpec((1, Nout), lambda i: (0, 0)),
                pl.BlockSpec((tm, Nout), lambda i: (i, 0)),   # residual, row-tiled
                pl.BlockSpec((1, Nout), lambda i: (0, 0)),
            ],
            out_specs=pl.BlockSpec((tm, Nout), lambda i: (i, 0)),
        ),
        compiler_params=_mosaic_params(bytes_per_step),
    )(x2d, w, shift, alpha, res2d, alpha_out)
    return out[:M]


# ----------------------------------------------------------------------------
# banded-matrix lowering of the padded 1-D (asymmetric) convs
# ----------------------------------------------------------------------------
def _conv1d_band_matrix(w_oik, L, scale=None):
    """w_oik: (Cout, Cin, K) 1-D conv weights, stride 1, 'same' padding (K-1)//2.
    Returns T of shape (L*Cin, L*Cout) with T[(p,c),(h,d)] = w[d,c,p-h+pad]
    (zero outside the band), so out[(row),(h,d)] = x[(row),(p,c)] @ T equals the
    zero-padded conv.  Optionally folds a per-output-channel BN scale."""
    Cout, Cin, K = w_oik.shape
    pad = (K - 1) // 2
    idx = jnp.arange(L)
    masks = jnp.stack(
        [(idx[:, None] == (idx[None, :] + k - pad)).astype(jnp.float32) for k in range(K)],
        axis=0)                                            # (K, L, L): masks[k,p,h]
    wk = w_oik if scale is None else w_oik * scale[:, None, None]
    T = jnp.einsum("kph,dck->pchd", masks, wk)             # (L, Cin, L, Cout)
    return T.reshape(L * Cin, L * Cout)


def _tile_over(vec, L):
    # per-channel vector -> (1, L*C) in (position, channel) order
    return jnp.tile(vec.reshape(1, -1), (L, 1)).reshape(1, -1)


# ----------------------------------------------------------------------------
# Parameter initialization (deterministic, synthetic — mirrors module __init__ shapes)
# ----------------------------------------------------------------------------
def init_params(key, in_dim, out_dim, projection_factor):
    mid = int(in_dim / projection_factor)
    ks = iter(jax.random.split(key, 32))

    def conv_w(cin, cout, kh=1, kw=1):
        return 0.1 * jax.random.normal(next(ks), (cout, cin, kh, kw), jnp.float32)

    def vec(cout, scale=0.05, offset=0.0):
        return offset + scale * jax.random.normal(next(ks), (cout,), jnp.float32)

    def bn(cout):
        return dict(gamma=vec(cout, 0.1, 1.0), beta=vec(cout, 0.1, 0.0),
                    mean=vec(cout, 0.1, 0.0), var=jnp.abs(vec(cout, 0.1, 1.0)))

    p = {
        "w0": conv_w(in_dim, mid), "b0": vec(mid), "bn0": bn(mid), "prelu0": jnp.float32(0.25),
        "w1a": conv_w(mid, mid, 5, 1), "b1a": vec(mid),
        "w1b": conv_w(mid, mid, 1, 5), "b1b": vec(mid),
        "bn1": bn(mid), "prelu1": jnp.float32(0.25),
        "w2": conv_w(mid, out_dim), "b2": vec(out_dim), "bn2": bn(out_dim),
        "prelu2": jnp.float32(0.25),
        "prelu_out": jnp.float32(0.25),
    }
    if in_dim > out_dim:
        p.update({"wc": conv_w(in_dim, out_dim), "bc": vec(out_dim),
                  "bnc": bn(out_dim), "preluc": jnp.float32(0.25)})
    return p


# ----------------------------------------------------------------------------
# Forward pass
# ----------------------------------------------------------------------------
def bottleneck_forward(x_nchw, params, in_dim, out_dim, eps=1e-5):
    N, C, H, W = x_nchw.shape
    assert C == in_dim
    mid = params["w0"].shape[0]
    M = N * H * W
    bf16 = jnp.bfloat16

    x_nhwc = jnp.transpose(x_nchw, (0, 2, 3, 1)).astype(jnp.float32)   # NHWC
    x2d = x_nhwc.reshape(M, C).astype(bf16)

    def fold_bn(bnp, conv_bias):
        s = bnp["gamma"] / jnp.sqrt(bnp["var"] + eps)
        t = bnp["beta"] + s * (conv_bias - bnp["mean"])
        return s, t

    def pvec(alpha, n):
        return jnp.full((1, n), alpha, jnp.float32)

    # ---- block0 (1x1 + BN + PReLU) fused with conv_out projection (shares activation DMA)
    s0, t0 = fold_bn(params["bn0"], params["b0"])
    w0m = (jnp.transpose(params["w0"][:, :, 0, 0], (1, 0)) * s0[None, :]).astype(bf16)
    if in_dim > out_dim:
        sc, tc = fold_bn(params["bnc"], params["bc"])
        wcm = (jnp.transpose(params["wc"][:, :, 0, 0], (1, 0)) * sc[None, :]).astype(bf16)
        b0, res = dual_pointwise_conv(
            x2d, w0m, t0.reshape(1, -1), pvec(params["prelu0"], mid),
            wcm, tc.reshape(1, -1), pvec(params["preluc"], out_dim))
    else:
        # PyTorch adds `input + do` here, which requires in_dim == out_dim.
        assert in_dim == out_dim, "residual add requires in_dim == out_dim when conv_out is absent"
        b0 = matmul_bias_act(x2d, w0m, t0.reshape(1, -1), pvec(params["prelu0"], mid))
        res = x2d

    # ---- block1a: (5,1) conv over H (bias only) as one banded matmul per (n, w) row.
    # No im2col materialization in HBM; output lane-width is H*mid.
    b0_nwhc = jnp.transpose(b0.reshape(N, H, W, mid), (0, 2, 1, 3))     # (N, W, H, mid)
    T1 = _conv1d_band_matrix(params["w1a"][:, :, :, 0], H).astype(bf16)  # (H*mid, H*mid)
    y1a = matmul_bias_act(b0_nwhc.reshape(N * W, H * mid), T1,
                          _tile_over(params["b1a"], H))                  # (N*W, H*mid) bf16

    # ---- block1b: (1,5) conv over W + folded BN + PReLU, same banded-matmul trick.
    y1a_nhwc = jnp.transpose(y1a.reshape(N, W, H, mid), (0, 2, 1, 3))    # (N, H, W, mid)
    s1, t1 = fold_bn(params["bn1"], params["b1b"])
    T2 = _conv1d_band_matrix(params["w1b"][:, :, 0, :], W, scale=s1).astype(bf16)
    b1 = matmul_bias_act(y1a_nhwc.reshape(N * H, W * mid), T2,
                         _tile_over(t1, W), pvec(params["prelu1"], W * mid))  # (N*H, W*mid)

    # ---- block2 (1x1 + BN + PReLU) fused with residual add + PReLU_out.
    # TODO(synk): nn.Dropout is stochastic; implemented as identity (inference mode).
    s2, t2 = fold_bn(params["bn2"], params["b2"])
    w2m = (jnp.transpose(params["w2"][:, :, 0, 0], (1, 0)) * s2[None, :]).astype(bf16)
    out2d = pointwise_conv_residual(
        b1.reshape(M, mid), w2m, t2.reshape(1, -1), pvec(params["prelu2"], out_dim),
        res, pvec(params["prelu_out"], out_dim), out_dtype=jnp.float32)

    out = out2d.reshape(N, H, W, out_dim)
    return jnp.transpose(out, (0, 3, 1, 2))                              # back to NCHW


# ----------------------------------------------------------------------------
if __name__ == "__main__":
    key = jax.random.PRNGKey(0)
    in_dim, out_dim, projection_factor, dropout_rate = 8, 4, 4, 0.1  # in_dim > out_dim: conv_out path
    kx, kp = jax.random.split(key)

    x = jax.random.normal(kx, (2, in_dim, 16, 16), jnp.float32)      # NCHW, PyTorch convention
    params = init_params(kp, in_dim, out_dim, projection_factor)

    fwd = jax.jit(functools.partial(bottleneck_forward, in_dim=in_dim, out_dim=out_dim))
    out = jax.block_until_ready(fwd(x, params))
    assert out.shape == (2, out_dim, 16, 16), out.shape
    assert bool(jnp.all(jnp.isfinite(out)))
    print("KERNEL_OK")
</pallas_src>

<mosaic_0001>
module attributes {stable_mosaic.version = 11 : i64} {
  func.func @_dual_mm_kernel(%arg0: i32, %arg1: memref<256x8xbf16, #tpu.memory_space<vmem>>, %arg2: memref<8x2xbf16, #tpu.memory_space<vmem>>, %arg3: memref<1x2xf32, #tpu.memory_space<vmem>>, %arg4: memref<1x2xf32, #tpu.memory_space<vmem>>, %arg5: memref<8x4xbf16, #tpu.memory_space<vmem>>, %arg6: memref<1x4xf32, #tpu.memory_space<vmem>>, %arg7: memref<1x4xf32, #tpu.memory_space<vmem>>, %arg8: memref<256x2xbf16, #tpu.memory_space<vmem>>, %arg9: memref<256x4xbf16, #tpu.memory_space<vmem>>) attributes {dimension_semantics = [#tpu.dimension_semantics<parallel>], iteration_bounds = array<i64: 2>, scalar_prefetch = 0 : i64, scratch_operands = 0 : i64, tpu.core_type = #tpu.core_type<tc>, window_params = [{transform_indices = @transform_0, window_bounds = array<i64: 256, 8>}, {pipeline_mode = #tpu.pipeline_mode<synchronous>, transform_indices = @transform_1, window_bounds = array<i64: 8, 2>}, {pipeline_mode = #tpu.pipeline_mode<synchronous>, transform_indices = @transform_2, window_bounds = array<i64: 1, 2>}, {pipeline_mode = #tpu.pipeline_mode<synchronous>, transform_indices = @transform_3, window_bounds = array<i64: 1, 2>}, {pipeline_mode = #tpu.pipeline_mode<synchronous>, transform_indices = @transform_4, window_bounds = array<i64: 8, 4>}, {pipeline_mode = #tpu.pipeline_mode<synchronous>, transform_indices = @transform_5, window_bounds = array<i64: 1, 4>}, {pipeline_mode = #tpu.pipeline_mode<synchronous>, transform_indices = @transform_6, window_bounds = array<i64: 1, 4>}, {transform_indices = @transform_7, window_bounds = array<i64: 256, 2>}, {transform_indices = @transform_8, window_bounds = array<i64: 256, 4>}]} {
    %c0 = arith.constant 0 : index
    %c0_0 = arith.constant 0 : index
    %0 = vector.load %arg1[%c0, %c0_0] : memref<256x8xbf16, #tpu.memory_space<vmem>>, vector<256x8xbf16>
    %c0_1 = arith.constant 0 : index
    %c0_2 = arith.constant 0 : index
    %1 = vector.load %arg2[%c0_1, %c0_2] : memref<8x2xbf16, #tpu.memory_space<vmem>>, vector<8x2xbf16>
    %cst = arith.constant dense<0.000000e+00> : vector<256x2xf32>
    %2 = tpu.matmul %0, %1, %cst {dimension_numbers = #tpu.dot_dimension_numbers<[1], [0], [0], [1], [0, 0, 1, 1], [], []>} : vector<256x8xbf16>, vector<8x2xbf16>, vector<256x2xf32> -> vector<256x2xf32>
    %c0_3 = arith.constant 0 : index
    %c0_4 = arith.constant 0 : index
    %3 = vector.load %arg3[%c0_3, %c0_4] : memref<1x2xf32, #tpu.memory_space<vmem>>, vector<1x2xf32>
    %4 = vector.broadcast %3 : vector<1x2xf32> to vector<256x2xf32>
    %5 = arith.addf %2, %4 : vector<256x2xf32>
    %cst_5 = arith.constant 0.000000e+00 : f32
    %6 = vector.broadcast %cst_5 : f32 to vector<256x2xf32>
    %7 = arith.cmpf oge, %5, %6 : vector<256x2xf32>
    %c0_6 = arith.constant 0 : index
    %c0_7 = arith.constant 0 : index
    %8 = vector.load %arg4[%c0_6, %c0_7] : memref<1x2xf32, #tpu.memory_space<vmem>>, vector<1x2xf32>
    %9 = vector.broadcast %8 : vector<1x2xf32> to vector<256x2xf32>
    %10 = arith.mulf %9, %5 : vector<256x2xf32>
    %11 = arith.select %7, %5, %10 : vector<256x2xi1>, vector<256x2xf32>
    %12 = arith.truncf %11 : vector<256x2xf32> to vector<256x2xbf16>
    %c0_8 = arith.constant 0 : index
    %c0_9 = arith.constant 0 : index
    %13 = vector.load %arg8[%c0_8, %c0_9] : memref<256x2xbf16, #tpu.memory_space<vmem>>, vector<256x2xbf16>
    tpu.vector_store %arg8[%c0_8, %c0_9], %12 {strides = array<i32>} : memref<256x2xbf16, #tpu.memory_space<vmem>>, vector<256x2xbf16>,
    %c0_10 = arith.constant 0 : index
    %c0_11 = arith.constant 0 : index
    %14 = vector.load %arg5[%c0_10, %c0_11] : memref<8x4xbf16, #tpu.memory_space<vmem>>, vector<8x4xbf16>
    %cst_12 = arith.constant dense<0.000000e+00> : vector<256x4xf32>
    %15 = tpu.matmul %0, %14, %cst_12 {dimension_numbers = #tpu.dot_dimension_numbers<[1], [0], [0], [1], [0, 0, 1, 1], [], []>} : vector<256x8xbf16>, vector<8x4xbf16>, vector<256x4xf32> -> vector<256x4xf32>
    %c0_13 = arith.constant 0 : index
    %c0_14 = arith.constant 0 : index
    %16 = vector.load %arg6[%c0_13, %c0_14] : memref<1x4xf32, #tpu.memory_space<vmem>>, vector<1x4xf32>
    %17 = vector.broadcast %16 : vector<1x4xf32> to vector<256x4xf32>
    %18 = arith.addf %15, %17 : vector<256x4xf32>
    %cst_15 = arith.constant 0.000000e+00 : f32
    %19 = vector.broadcast %cst_15 : f32 to vector<256x4xf32>
    %20 = arith.cmpf oge, %18, %19 : vector<256x4xf32>
    %c0_16 = arith.constant 0 : index
    %c0_17 = arith.constant 0 : index
    %21 = vector.load %arg7[%c0_16, %c0_17] : memref<1x4xf32, #tpu.memory_space<vmem>>, vector<1x4xf32>
    %22 = vector.broadcast %21 : vector<1x4xf32> to vector<256x4xf32>
    %23 = arith.mulf %22, %18 : vector<256x4xf32>
    %24 = arith.select %20, %18, %23 : vector<256x4xi1>, vector<256x4xf32>
    %25 = arith.truncf %24 : vector<256x4xf32> to vector<256x4xbf16>
    %c0_18 = arith.constant 0 : index
    %c0_19 = arith.constant 0 : index
    %26 = vector.load %arg9[%c0_18, %c0_19] : memref<256x4xbf16, #tpu.memory_space<vmem>>, vector<256x4xbf16>
    tpu.vector_store %arg9[%c0_18, %c0_19], %25 {strides = array<i32>} : memref<256x4xbf16, #tpu.memory_space<vmem>>, vector<256x4xbf16>,
    return
  }
  func.func @transform_0(%arg0: i32) -> (i32, i32) {
    %c0_i32 = arith.constant 0 : i32
    %c0_i32_0 = arith.constant 0 : i32
    return %arg0, %c0_i32 : i32, i32
  }
  func.func @transform_1(%arg0: i32) -> (i32, i32) {
    %c0_i32 = arith.constant 0 : i32
    %c0_i32_0 = arith.constant 0 : i32
    %c0_i32_1 = arith.constant 0 : i32
    return %c0_i32, %c0_i32_0 : i32, i32
  }
  func.func @transform_2(%arg0: i32) -> (i32, i32) {
    %c0_i32 = arith.constant 0 : i32
    %c0_i32_0 = arith.constant 0 : i32
    %c0_i32_1 = arith.constant 0 : i32
    return %c0_i32, %c0_i32_0 : i32, i32
  }
  func.func @transform_3(%arg0: i32) -> (i32, i32) {
    %c0_i32 = arith.constant 0 : i32
    %c0_i32_0 = arith.constant 0 : i32
    %c0_i32_1 = arith.constant 0 : i32
    return %c0_i32, %c0_i32_0 : i32, i32
  }
  func.func @transform_4(%arg0: i32) -> (i32, i32) {
    %c0_i32 = arith.constant 0 : i32
    %c0_i32_0 = arith.constant 0 : i32
    %c0_i32_1 = arith.constant 0 : i32
    return %c0_i32, %c0_i32_0 : i32, i32
  }
  func.func @transform_5(%arg0: i32) -> (i32, i32) {
    %c0_i32 = arith.constant 0 : i32
    %c0_i32_0 = arith.constant 0 : i32
    %c0_i32_1 = arith.constant 0 : i32
    return %c0_i32, %c0_i32_0 : i32, i32
  }
  func.func @transform_6(%arg0: i32) -> (i32, i32) {
    %c0_i32 = arith.constant 0 : i32
    %c0_i32_0 = arith.constant 0 : i32
    %c0_i32_1 = arith.constant 0 : i32
    return %c0_i32, %c0_i32_0 : i32, i32
  }
  func.func @transform_7(%arg0: i32) -> (i32, i32) {
    %c0_i32 = arith.constant 0 : i32
    %c0_i32_0 = arith.constant 0 : i32
    return %arg0, %c0_i32 : i32, i32
  }
  func.func @transform_8(%arg0: i32) -> (i32, i32) {
    %c0_i32 = arith.constant 0 : i32
    %c0_i32_0 = arith.constant 0 : i32
    return %arg0, %c0_i32 : i32, i32
  }
}

module attributes {stable_mosaic.version = 11 : i64} {
  func.func @_mm_bias_kernel(%arg0: i32, %arg1: memref<16x32xbf16, #tpu.memory_space<vmem>>, %arg2: memref<32x32xbf16, #tpu.memory_space<vmem>>, %arg3: memref<1x32xf32, #tpu.memory_space<vmem>>, %arg4: memref<16x32xbf16, #tpu.memory_space<vmem>>) attributes {dimension_semantics = [#tpu.dimension_semantics<parallel>], iteration_bounds = array<i64: 2>, scalar_prefetch = 0 : i64, scratch_operands = 0 : i64, tpu.core_type = #tpu.core_type<tc>, window_params = [{transform_indices = @transform_0, window_bounds = array<i64: 16, 32>}, {pipeline_mode = #tpu.pipeline_mode<synchronous>, transform_indices = @transform_1, window_bounds = array<i64: 32, 32>}, {pipeline_mode = #tpu.pipeline_mode<synchronous>, transform_indices = @transform_2, window_bounds = array<i64: 1, 32>}, {transform_indices = @transform_3, window_bounds = array<i64: 16, 32>}]} {
    %c0 = arith.constant 0 : index
    %c0_0 = arith.constant 0 : index
    %0 = vector.load %arg1[%c0, %c0_0] : memref<16x32xbf16, #tpu.memory_space<vmem>>, vector<16x32xbf16>
    %c0_1 = arith.constant 0 : index
    %c0_2 = arith.constant 0 : index
    %1 = vector.load %arg2[%c0_1, %c0_2] : memref<32x32xbf16, #tpu.memory_space<vmem>>, vector<32x32xbf16>
    %cst = arith.constant dense<0.000000e+00> : vector<16x32xf32>
    %2 = tpu.matmul %0, %1, %cst {dimension_numbers = #tpu.dot_dimension_numbers<[1], [0], [0], [1], [0, 0, 1, 1], [], []>} : vector<16x32xbf16>, vector<32x32xbf16>, vector<16x32xf32> -> vector<16x32xf32>
    %c0_3 = arith.constant 0 : index
    %c0_4 = arith.constant 0 : index
    %3 = vector.load %arg3[%c0_3, %c0_4] : memref<1x32xf32, #tpu.memory_space<vmem>>, vector<1x32xf32>
    %4 = vector.broadcast %3 : vector<1x32xf32> to vector<16x32xf32>
    %5 = arith.addf %2, %4 : vector<16x32xf32>
    %6 = arith.truncf %5 : vector<16x32xf32> to vector<16x32xbf16>
    %c0_5 = arith.constant 0 : index
    %c0_6 = arith.constant 0 : index
    %7 = vector.load %arg4[%c0_5, %c0_6] : memref<16x32xbf16, #tpu.memory_space<vmem>>, vector<16x32xbf16>
    tpu.vector_store %arg4[%c0_5, %c0_6], %6 {strides = array<i32>} : memref<16x32xbf16, #tpu.memory_space<vmem>>, vector<16x32xbf16>,
    return
  }
  func.func @transform_0(%arg0: i32) -> (i32, i32) {
    %c0_i32 = arith.constant 0 : i32
    %c0_i32_0 = arith.constant 0 : i32
    return %arg0, %c0_i32 : i32, i32
  }
  func.func @transform_1(%arg0: i32) -> (i32, i32) {
    %c0_i32 = arith.constant 0 : i32
    %c0_i32_0 = arith.constant 0 : i32
    %c0_i32_1 = arith.constant 0 : i32
    return %c0_i32, %c0_i32_0 : i32, i32
  }
  func.func @transform_2(%arg0: i32) -> (i32, i32) {
    %c0_i32 = arith.constant 0 : i32
    %c0_i32_0 = arith.constant 0 : i32
    %c0_i32_1 = arith.constant 0 : i32
    return %c0_i32, %c0_i32_0 : i32, i32
  }
  func.func @transform_3(%arg0: i32) -> (i32, i32) {
    %c0_i32 = arith.constant 0 : i32
    %c0_i32_0 = arith.constant 0 : i32
    return %arg0, %c0_i32 : i32, i32
  }
}

module attributes {stable_mosaic.version = 11 : i64} {
  func.func @_mm_bias_prelu_kernel(%arg0: i32, %arg1: memref<16x32xbf16, #tpu.memory_space<vmem>>, %arg2: memref<32x32xbf16, #tpu.memory_space<vmem>>, %arg3: memref<1x32xf32, #tpu.memory_space<vmem>>, %arg4: memref<1x32xf32, #tpu.memory_space<vmem>>, %arg5: memref<16x32xbf16, #tpu.memory_space<vmem>>) attributes {dimension_semantics = [#tpu.dimension_semantics<parallel>], iteration_bounds = array<i64: 2>, scalar_prefetch = 0 : i64, scratch_operands = 0 : i64, tpu.core_type = #tpu.core_type<tc>, window_params = [{transform_indices = @transform_0, window_bounds = array<i64: 16, 32>}, {pipeline_mode = #tpu.pipeline_mode<synchronous>, transform_indices = @transform_1, window_bounds = array<i64: 32, 32>}, {pipeline_mode = #tpu.pipeline_mode<synchronous>, transform_indices = @transform_2, window_bounds = array<i64: 1, 32>}, {pipeline_mode = #tpu.pipeline_mode<synchronous>, transform_indices = @transform_3, window_bounds = array<i64: 1, 32>}, {transform_indices = @transform_4, window_bounds = array<i64: 16, 32>}]} {
    %c0 = arith.constant 0 : index
    %c0_0 = arith.constant 0 : index
    %0 = vector.load %arg1[%c0, %c0_0] : memref<16x32xbf16, #tpu.memory_space<vmem>>, vector<16x32xbf16>
    %c0_1 = arith.constant 0 : index
    %c0_2 = arith.constant 0 : index
    %1 = vector.load %arg2[%c0_1, %c0_2] : memref<32x32xbf16, #tpu.memory_space<vmem>>, vector<32x32xbf16>
    %cst = arith.constant dense<0.000000e+00> : vector<16x32xf32>
    %2 = tpu.matmul %0, %1, %cst {dimension_numbers = #tpu.dot_dimension_numbers<[1], [0], [0], [1], [0, 0, 1, 1], [], []>} : vector<16x32xbf16>, vector<32x32xbf16>, vector<16x32xf32> -> vector<16x32xf32>
    %c0_3 = arith.constant 0 : index
    %c0_4 = arith.constant 0 : index
    %3 = vector.load %arg3[%c0_3, %c0_4] : memref<1x32xf32, #tpu.memory_space<vmem>>, vector<1x32xf32>
    %4 = vector.broadcast %3 : vector<1x32xf32> to vector<16x32xf32>
    %5 = arith.addf %2, %4 : vector<16x32xf32>
    %cst_5 = arith.constant 0.000000e+00 : f32
    %6 = vector.broadcast %cst_5 : f32 to vector<16x32xf32>
    %7 = arith.cmpf oge, %5, %6 : vector<16x32xf32>
    %c0_6 = arith.constant 0 : index
    %c0_7 = arith.constant 0 : index
    %8 = vector.load %arg4[%c0_6, %c0_7] : memref<1x32xf32, #tpu.memory_space<vmem>>, vector<1x32xf32>
    %9 = vector.broadcast %8 : vector<1x32xf32> to vector<16x32xf32>
    %10 = arith.mulf %9, %5 : vector<16x32xf32>
    %11 = arith.select %7, %5, %10 : vector<16x32xi1>, vector<16x32xf32>
    %12 = arith.truncf %11 : vector<16x32xf32> to vector<16x32xbf16>
    %c0_8 = arith.constant 0 : index
    %c0_9 = arith.constant 0 : index
    %13 = vector.load %arg5[%c0_8, %c0_9] : memref<16x32xbf16, #tpu.memory_space<vmem>>, vector<16x32xbf16>
    tpu.vector_store %arg5[%c0_8, %c0_9], %12 {strides = array<i32>} : memref<16x32xbf16, #tpu.memory_space<vmem>>, vector<16x32xbf16>,
    return
  }
  func.func @transform_0(%arg0: i32) -> (i32, i32) {
    %c0_i32 = arith.constant 0 : i32
    %c0_i32_0 = arith.constant 0 : i32
    return %arg0, %c0_i32 : i32, i32
  }
  func.func @transform_1(%arg0: i32) -> (i32, i32) {
    %c0_i32 = arith.constant 0 : i32
    %c0_i32_0 = arith.constant 0 : i32
    %c0_i32_1 = arith.constant 0 : i32
    return %c0_i32, %c0_i32_0 : i32, i32
  }
  func.func @transform_2(%arg0: i32) -> (i32, i32) {
    %c0_i32 = arith.constant 0 : i32
    %c0_i32_0 = arith.constant 0 : i32
    %c0_i32_1 = arith.constant 0 : i32
    return %c0_i32, %c0_i32_0 : i32, i32
  }
  func.func @transform_3(%arg0: i32) -> (i32, i32) {
    %c0_i32 = arith.constant 0 : i32
    %c0_i32_0 = arith.constant 0 : i32
    %c0_i32_1 = arith.constant 0 : i32
    return %c0_i32, %c0_i32_0 : i32, i32
  }
  func.func @transform_4(%arg0: i32) -> (i32, i32) {
    %c0_i32 = arith.constant 0 : i32
    %c0_i32_0 = arith.constant 0 : i32
    return %arg0, %c0_i32 : i32, i32
  }
}

module attributes {stable_mosaic.version = 11 : i64} {
  func.func @_mm_residual_kernel(%arg0: i32, %arg1: memref<256x2xbf16, #tpu.memory_space<vmem>>, %arg2: memref<2x4xbf16, #tpu.memory_space<vmem>>, %arg3: memref<1x4xf32, #tpu.memory_space<vmem>>, %arg4: memref<1x4xf32, #tpu.memory_space<vmem>>, %arg5: memref<256x4xbf16, #tpu.memory_space<vmem>>, %arg6: memref<1x4xf32, #tpu.memory_space<vmem>>, %arg7: memref<256x4xf32, #tpu.memory_space<vmem>>) attributes {dimension_semantics = [#tpu.dimension_semantics<parallel>], iteration_bounds = array<i64: 2>, scalar_prefetch = 0 : i64, scratch_operands = 0 : i64, tpu.core_type = #tpu.core_type<tc>, window_params = [{transform_indices = @transform_0, window_bounds = array<i64: 256, 2>}, {pipeline_mode = #tpu.pipeline_mode<synchronous>, transform_indices = @transform_1, window_bounds = array<i64: 2, 4>}, {pipeline_mode = #tpu.pipeline_mode<synchronous>, transform_indices = @transform_2, window_bounds = array<i64: 1, 4>}, {pipeline_mode = #tpu.pipeline_mode<synchronous>, transform_indices = @transform_3, window_bounds = array<i64: 1, 4>}, {transform_indices = @transform_4, window_bounds = array<i64: 256, 4>}, {pipeline_mode = #tpu.pipeline_mode<synchronous>, transform_indices = @transform_5, window_bounds = array<i64: 1, 4>}, {transform_indices = @transform_6, window_bounds = array<i64: 256, 4>}]} {
    %c0 = arith.constant 0 : index
    %c0_0 = arith.constant 0 : index
    %0 = vector.load %arg1[%c0, %c0_0] : memref<256x2xbf16, #tpu.memory_space<vmem>>, vector<256x2xbf16>
    %c0_1 = arith.constant 0 : index
    %c0_2 = arith.constant 0 : index
    %1 = vector.load %arg2[%c0_1, %c0_2] : memref<2x4xbf16, #tpu.memory_space<vmem>>, vector<2x4xbf16>
    %cst = arith.constant dense<0.000000e+00> : vector<256x4xf32>
    %2 = tpu.matmul %0, %1, %cst {dimension_numbers = #tpu.dot_dimension_numbers<[1], [0], [0], [1], [0, 0, 1, 1], [], []>} : vector<256x2xbf16>, vector<2x4xbf16>, vector<256x4xf32> -> vector<256x4xf32>
    %c0_3 = arith.constant 0 : index
    %c0_4 = arith.constant 0 : index
    %3 = vector.load %arg3[%c0_3, %c0_4] : memref<1x4xf32, #tpu.memory_space<vmem>>, vector<1x4xf32>
    %4 = vector.broadcast %3 : vector<1x4xf32> to vector<256x4xf32>
    %5 = arith.addf %2, %4 : vector<256x4xf32>
    %cst_5 = arith.constant 0.000000e+00 : f32
    %6 = vector.broadcast %cst_5 : f32 to vector<256x4xf32>
    %7 = arith.cmpf oge, %5, %6 : vector<256x4xf32>
    %c0_6 = arith.constant 0 : index
    %c0_7 = arith.constant 0 : index
    %8 = vector.load %arg4[%c0_6, %c0_7] : memref<1x4xf32, #tpu.memory_space<vmem>>, vector<1x4xf32>
    %9 = vector.broadcast %8 : vector<1x4xf32> to vector<256x4xf32>
    %10 = arith.mulf %9, %5 : vector<256x4xf32>
    %11 = arith.select %7, %5, %10 : vector<256x4xi1>, vector<256x4xf32>
    %c0_8 = arith.constant 0 : index
    %c0_9 = arith.constant 0 : index
    %12 = vector.load %arg5[%c0_8, %c0_9] : memref<256x4xbf16, #tpu.memory_space<vmem>>, vector<256x4xbf16>
    %13 = arith.extf %12 : vector<256x4xbf16> to vector<256x4xf32>
    %14 = arith.addf %11, %13 : vector<256x4xf32>
    %cst_10 = arith.constant 0.000000e+00 : f32
    %15 = vector.broadcast %cst_10 : f32 to vector<256x4xf32>
    %16 = arith.cmpf oge, %14, %15 : vector<256x4xf32>
    %c0_11 = arith.constant 0 : index
    %c0_12 = arith.constant 0 : index
    %17 = vector.load %arg6[%c0_11, %c0_12] : memref<1x4xf32, #tpu.memory_space<vmem>>, vector<1x4xf32>
    %18 = vector.broadcast %17 : vector<1x4xf32> to vector<256x4xf32>
    %19 = arith.mulf %18, %14 : vector<256x4xf32>
    %20 = arith.select %16, %14, %19 : vector<256x4xi1>, vector<256x4xf32>
    %c0_13 = arith.constant 0 : index
    %c0_14 = arith.constant 0 : index
    %21 = vector.load %arg7[%c0_13, %c0_14] : memref<256x4xf32, #tpu.memory_space<vmem>>, vector<256x4xf32>
    tpu.vector_store %arg7[%c0_13, %c0_14], %20 {strides = array<i32>} : memref<256x4xf32, #tpu.memory_space<vmem>>, vector<256x4xf32>,
    return
  }
  func.func @transform_0(%arg0: i32) -> (i32, i32) {
    %c0_i32 = arith.constant 0 : i32
    %c0_i32_0 = arith.constant 0 : i32
    return %arg0, %c0_i32 : i32, i32
  }
  func.func @transform_1(%arg0: i32) -> (i32, i32) {
    %c0_i32 = arith.constant 0 : i32
    %c0_i32_0 = arith.constant 0 : i32
    %c0_i32_1 = arith.constant 0 : i32
    return %c0_i32, %c0_i32_0 : i32, i32
  }
  func.func @transform_2(%arg0: i32) -> (i32, i32) {
    %c0_i32 = arith.constant 0 : i32
    %c0_i32_0 = arith.constant 0 : i32
    %c0_i32_1 = arith.constant 0 : i32
    return %c0_i32, %c0_i32_0 : i32, i32
  }
  func.func @transform_3(%arg0: i32) -> (i32, i32) {
    %c0_i32 = arith.constant 0 : i32
    %c0_i32_0 = arith.constant 0 : i32
    %c0_i32_1 = arith.constant 0 : i32
    return %c0_i32, %c0_i32_0 : i32, i32
  }
  func.func @transform_4(%arg0: i32) -> (i32, i32) {
    %c0_i32 = arith.constant 0 : i32
    %c0_i32_0 = arith.constant 0 : i32
    return %arg0, %c0_i32 : i32, i32
  }
  func.func @transform_5(%arg0: i32) -> (i32, i32) {
    %c0_i32 = arith.constant 0 : i32
    %c0_i32_0 = arith.constant 0 : i32
    %c0_i32_1 = arith.constant 0 : i32
    return %c0_i32, %c0_i32_0 : i32, i32
  }
  func.func @transform_6(%arg0: i32) -> (i32, i32) {
    %c0_i32 = arith.constant 0 : i32
    %c0_i32_0 = arith.constant 0 : i32
    return %arg0, %c0_i32 : i32, i32
  }
}

</mosaic_0001>

<bundles_post_ra>
// kernel: tile.14
= control target key start
LH: loop header
LB: loop body
LE: loop exit
PB: predicated region body
PF: predicated region fallthrough
CT: control target
= control target key end

     0   :  { %s28_s0 = inlined_call_operand.vmem [shape: f32[2], index: 0, kind: input, shape index: {}]   ;;  %s29_s1 = inlined_call_operand.vmem [shape: f32[16,1,1,2], index: 1, kind: output, shape index: {}]  }
   0x1   :  { %v4_v0 = vld [vmem:[%s28_s0] ss:$0 sm:$0xff] }
   0x2   :  { %5 = vst [vmem:[%s29_s1] sm:$0xff] %v4_v0  ;;  %8 = vst [vmem:[%s29_s1 + $0x8] sm:$0xff] %v4_v0 }

// kernel: tile.15
= control target key start
LH: loop header
LB: loop body
LE: loop exit
PB: predicated region body
PF: predicated region fallthrough
CT: control target
= control target key end

     0   :  { %s131_s10 = smov 30   ;;  %s132_s11 = smov 26   ;;  %vm3_vm0 = vcmask 15360   ;;  %vm9_vm1 = vcmask 261360   ;;  %vm15_vm2 = vcmask 244960   ;;  %vm21_vm3 = vcmask 228560   ;;  %s207_s0 = inlined_call_operand.vmem [shape: f32[16,1,1,2], index: 0, kind: input, shape index: {}]   ;;  %s208_s1 = inlined_call_operand.vmem [shape: f32[1,32], index: 1, kind: output, shape index: {}]  }
   0x1   :  { %v101_v0 = vld [vmem:[%s207_s0 + $0xf] sm:$0x1]   ;;  %v103_v1 = vld [vmem:[%s207_s0 + $0xd] sm:$0x1]   ;;  %v102_v2 = vld [vmem:[%s207_s0 + $0xe] sm:$0x1]  }
   0x2   :  { %7 = vrot.lane.b32.xlu0 %v101_v0, %s131_s10  ;;  %19 = vrot.lane.b32.xlu1 %v103_v1, %s132_s11  ;;  %v104_v3 = vld [vmem:[%s207_s0 + $0xc] sm:$0x1]   ;;  %s133_s16 = smov 28   ;;  %s134_s17 = smov 24   ;;  %v105_v4 = vld [vmem:[%s207_s0 + $0xb] sm:$0x1]  }
   0x3   :  { %v106_v5 = vld [vmem:[%s207_s0 + $0xa] sm:$0x1]   ;;  %v2_v6 = vld [vmem:[%s207_s0] sm:$0x1]   ;;  %s135_s24 = smov 22   ;;  %s136_s25 = smov 20  }
   0x4   :  { %4 = vst.msk [vmem:[#allocation0] sm:$0x1] %vm3_vm0, %v2_v6   ;;  %v107_v7 = vld [vmem:[%s207_s0 + $0x9] sm:$0x1]   ;;  %v108_v8 = vld [vmem:[%s207_s0 + $0x8] sm:$0x1]  }
   0x5   :  { %s137_s30 = smov 18   ;;  %s138_s2 = smov 16   ;;  %v109_v9 = vld [vmem:[%s207_s0 + $0x7] sm:$0x1]   ;;  %v110_v10 = vld [vmem:[%s207_s0 + $0x6] sm:$0x1]  }
   0x6   :  { %13 = vrot.lane.b32.xlu0 %v102_v2, %s133_s16  ;;  %25 = vrot.lane.b32.xlu1 %v104_v3, %s134_s17  ;;  %s139_s7 = smov 14   ;;  %s140_s8 = smov 12   ;;  %v111_v11 = vld [vmem:[%s207_s0 + $0x5] sm:$0x1]   ;;  %v112_v12 = vld [vmem:[%s207_s0 + $0x4] sm:$0x1]  }
   0x7   :  { %s141_s13 = smov 10   ;;  %s142_s14 = smov 8   ;;  %v113_v13 = vld [vmem:[%s207_s0 + $0x3] sm:$0x1]   ;;  %v114_v14 = vld [vmem:[%s207_s0 + $0x2] sm:$0x1]  }
   0x8   :  { %s143_s19 = smov 6   ;;  %s144_s20 = smov 4   ;;  %v115_v15 = vld [vmem:[%s207_s0 + $0x1] sm:$0x1]   ;;  %vm27_vm4 = vcmask 212160   ;;  %vm33_vm5 = vcmask 195760  }
   0x9   :  { %s145_s0 = smov 2   ;;  %vm39_vm6 = vcmask 179360   ;;  %vm45_vm7 = vcmask 162960   ;;  %vm51_vm8 = vcmask 146560   ;;  %vm57_vm9 = vcmask 130160  }
   0xa   :  { %31 = vrot.lane.b32.xlu0 %v105_v4, %s135_s24  ;;  %37 = vrot.lane.b32.xlu1 %v106_v5, %s136_s25  ;;  %vm63_vm10 = vcmask 113760   ;;  %vm69_vm11 = vcmask 97360   ;;  %vm75_vm12 = vcmask 80960   ;;  %vm81_vm13 = vcmask 64560  }
   0xb   :  { %vm87_vm14 = vcmask 48160   ;;  %vm93_vm15 = vcmask 31760  }
   0xe   :  { %43 = vrot.lane.b32.xlu0 %v107_v7, %s137_s30  ;;  %49 = vrot.lane.b32.xlu1 %v108_v8, %s138_s2 }
  0x12   :  { %55 = vrot.lane.b32.xlu0 %v109_v9, %s139_s7  ;;  %61 = vrot.lane.b32.xlu1 %v110_v10, %s140_s8 }
  0x16   :  { %67 = vrot.lane.b32.xlu0 %v111_v11, %s141_s13  ;;  %73 = vrot.lane.b32.xlu1 %v112_v12, %s142_s14 }
  0x1a   :  { %79 = vrot.lane.b32.xlu0 %v113_v13, %s143_s19  ;;  %85 = vrot.lane.b32.xlu1 %v114_v14, %s144_s20 }
  0x1e   :  { %91 = vrot.lane.b32.xlu0 %v115_v15, %s145_s0 }
  0x74   :  { %v8_v16 = vpop.permute.xlu0 %7   ;;  %v20_v17 = vpop.permute.xlu1 %19  }
  0x75   :  { %10 = vst.msk [vmem:[#allocation0] sm:$0x1] %vm9_vm1, %v8_v16  }
  0x78   :  { %v14_v18 = vpop.permute.xlu0 %13   ;;  %v26_v19 = vpop.permute.xlu1 %25  }
  0x79   :  { %16 = vst.msk [vmem:[#allocation0] sm:$0x1] %vm15_vm2, %v14_v18  }
  0x7a   :  { %22 = vst.msk [vmem:[#allocation0] sm:$0x1] %vm21_vm3, %v20_v17  }
  0x7b   :  { %28 = vst.msk [vmem:[#allocation0] sm:$0x1] %vm27_vm4, %v26_v19  }
  0x7c   :  { %v32_v20 = vpop.permute.xlu0 %31   ;;  %v38_v21 = vpop.permute.xlu1 %37  }
  0x7d   :  { %34 = vst.msk [vmem:[#allocation0] sm:$0x1] %vm33_vm5, %v32_v20  }
  0x7e   :  { %40 = vst.msk [vmem:[#allocation0] sm:$0x1] %vm39_vm6, %v38_v21  }
  0x80   :  { %v44_v22 = vpop.permute.xlu0 %43   ;;  %v50_v23 = vpop.permute.xlu1 %49  }
  0x81   :  { %46 = vst.msk [vmem:[#allocation0] sm:$0x1] %vm45_vm7, %v44_v22  }
  0x82   :  { %52 = vst.msk [vmem:[#allocation0] sm:$0x1] %vm51_vm8, %v50_v23  }
  0x84   :  { %v56_v24 = vpop.permute.xlu0 %55   ;;  %v62_v25 = vpop.permute.xlu1 %61  }
  0x85   :  { %58 = vst.msk [vmem:[#allocation0] sm:$0x1] %vm57_vm9, %v56_v24  }
  0x86   :  { %64 = vst.msk [vmem:[#allocation0] sm:$0x1] %vm63_vm10, %v62_v25  }
  0x88   :  { %v68_v26 = vpop.permute.xlu0 %67   ;;  %v74_v27 = vpop.permute.xlu1 %73  }
  0x89   :  { %70 = vst.msk [vmem:[#allocation0] sm:$0x1] %vm69_vm11, %v68_v26  }
  0x8a   :  { %76 = vst.msk [vmem:[#allocation0] sm:$0x1] %vm75_vm12, %v74_v27  }
  0x8c   :  { %v80_v28 = vpop.permute.xlu0 %79   ;;  %v86_v29 = vpop.permute.xlu1 %85  }
  0x8d   :  { %82 = vst.msk [vmem:[#allocation0] sm:$0x1] %vm81_vm13, %v80_v28  }
  0x8e   :  { %88 = vst.msk [vmem:[#allocation0] sm:$0x1] %vm87_vm14, %v86_v29  }
  0x90   :  { %v92_v30 = vpop.permute.xlu0 %91  }
  0x91   :  { %94 = vst.msk [vmem:[#allocation0] sm:$0x1] %vm93_vm15, %v92_v30  }
  0x98   :  { %v98_v31 = vld [vmem:[#allocation0] sm:$0x1] }
  0x99   :  { %100 = vst [vmem:[%s208_s1] sm:$0x1] %v98_v31 }

// kernel: bottleneck_forward.6
= control target key start
LH: loop header
LB: loop body
LE: loop exit
PB: predicated region body
PF: predicated region fallthrough
CT: control target
= control target key end

     0   :  { %s437_s15 = smov 0   ;;  %s466_s0 = inlined_call_operand.vmem [shape: bf16[32,32], index: 0, kind: input, shape index: {}]   ;;  %s467_s1 = inlined_call_operand.vmem [shape: bf16[32,32], index: 1, kind: input, shape index: {}]   ;;  %s468_s2 = inlined_call_operand.vmem [shape: f32[1,32], index: 2, kind: input, shape index: {}]   ;;  %s469_s3 = inlined_call_operand.vmem [shape: f32[1,32], index: 3, kind: input, shape index: {}]   ;;  %s470_s4 = inlined_call_operand.vmem [shape: bf16[32,32], index: 4, kind: output, shape index: {}]  }
   0x1 LB: > { %s357_s16 = sadd.s32 4294967295, %s408_s15   ;;  %p361_p0 = scmp.ge.s32.totalorder %s408_s15, 1  ;;  %s408_s15 = sphi %s437_s15, %s14_s15  }
   0x2   : > { %p163_p1 = scmp.lt.s32.totalorder %s408_s15, 3 }
   0x4   : > { %p164_p2 = pnand %p361_p0, %p163_p1 }
   0x5   : > { %v399_v0 = vld [vmem:[%s467_s1] sm:$0xff] (!%p164_p2)   ;;  %v410_v1 = vmov (!%p164_p2), 0.0   ;;  %v400_v2 = vld [vmem:[%s467_s1 + $0x8] sm:$0xff] (!%p164_p2)   ;;  %vm411_vm0 = vmmov (!%p164_p2), 0   ;;  %s362_s21 = sshll.u32 (!%p164_p2), %s357_s16, 1  ;;  %vm232_vm1 = vcmask (!%p164_p2), 261120  }
   0x6   : > { %167 = sbr.rel (%p164_p2) target bundleno = 239 (0xef), region = 36  ;;  %381 = vmatprep.subr.bf16.mxu0 (!%p164_p2), %v410_v1  ;;  %385 = vmatprep.mubr.msk.bf16.mxu0 (!%p164_p2), %vm411_vm0, %v410_v1  ;;  %p190_p3 = scmp.lt.s32.totalorder (!%p164_p2), %s362_s21, 3  ;;  %v366_v4 = vld [vmem:[%s468_s2] ss:$0 sm:$0xff] (!%p164_p2)  ;;  %vm298_vm3 = vcmask (!%p164_p2), 257024  }
   0x7   : > { %382 = vmatpush3.bf16.msra.mxu0 (!%p164_p2), %v399_v0  ;;  %v371_v6 = vld [vmem:[%s469_s3] ss:$0 sm:$0xff] (!%p164_p2) }
   0x8   : > { %383 = vmatprep.subr.bf16.mxu0 (!%p164_p2), %v410_v1 }
   0xb   : > { %384 = vmatpush3.bf16.msra.mxu0 (!%p164_p2), %v400_v2 }
   0xd   : > { %s472_s21 = smov (!%p190_p3, %s362_s21), 3 }
   0xe   : > { %s363_s22 = sshll.u32 %s472_s21, 2 }
   0xf   : > { %s193_s25 = scalar_lea.vmem %s466_s0, %s363_s22  ;;  %s199_s6 = scalar_lea.vmem %s470_s4, %s363_s22 }
  0x10   : > { %v401_v3 = vld [vmem:[%s193_s25] sm:$0xff]  }
  0x11   : > { %386 = vmatmul.mubr.msk.bf16.vlgmr.msra.gmra.mrb[0].mxu0 %vm232_vm1, %v401_v3 }
  0xe4   : > { %v270_v5 = vpop.f32.mrb[0].mxu0 }
  0xe5   : > { %v271_v7 = vadd.f32 %v366_v4, %v270_v5  ;;  %v387_v8 = vpop.f32.mrb[1].mxu0 }
  0xe6   : > { %v273_v9 = vpop.f32.mrb[2].mxu0 }
  0xe7   : > { %vm277_vm2 = vcmp.ge.f32.partialorder %v271_v7, 0.0  ;;  %v286_v10 = vmul.f32 %v371_v6, %v271_v7  ;;  %v274_v11 = vadd.f32 %v366_v4, %v273_v9  ;;  %v388_v12 = vpop.f32.mrb[3].mxu0 }
  0xe9   : > { %v288_v13 = vsel %vm277_vm2, %v271_v7, %v286_v10  ;;  %vm278_vm4 = vcmp.ge.f32.partialorder %v274_v11, 0.0  ;;  %v287_v14 = vmul.f32 %v371_v6, %v274_v11 }
  0xea   : > { %v376_v15 = vpack.c.bf16 %v288_v13, %v288_v13 }
  0xeb   : > { %v289_v16 = vsel %vm278_vm4, %v274_v11, %v287_v14 }
  0xec   : > { %299 = vst.msk [vmem:[%s199_s6] sm:$0xf] %vm298_vm3, %v376_v15  ;;  %v377_v17 = vpack.c.bf16 %v289_v16, %v289_v16 }
  0xee   : > { %300 = vst.msk [vmem:[%s199_s6 + $0x4] sm:$0xf] %vm298_vm3, %v377_v17 }
  0xef PF: > { %s14_s15 = sadd.s32 1, %s408_s15  }
  0xf0   : > { %p11_p4 = scmp.ge.s32.totalorder %s14_s15, 4  }
  0xf2   :  { %13 = sbr.rel (!%p11_p4) target bundleno = 1 (0x1), region = 66 }

// kernel: bottleneck_forward.5
= control target key start
LH: loop header
LB: loop body
LE: loop exit
PB: predicated region body
PF: predicated region fallthrough
CT: control target
= control target key end

     0   :  { %s391_s12 = smov 0   ;;  %s417_s0 = inlined_call_operand.vmem [shape: bf16[32,32], index: 0, kind: input, shape index: {}]   ;;  %s418_s1 = inlined_call_operand.vmem [shape: bf16[32,32], index: 1, kind: input, shape index: {}]   ;;  %s419_s2 = inlined_call_operand.vmem [shape: f32[1,32], index: 2, kind: input, shape index: {}]   ;;  %s420_s3 = inlined_call_operand.vmem [shape: bf16[32,32], index: 3, kind: output, shape index: {}]  }
   0x1 LB: > { %s317_s13 = sadd.s32 4294967295, %s367_s12   ;;  %p321_p0 = scmp.ge.s32.totalorder %s367_s12, 1  ;;  %s367_s12 = sphi %s391_s12, %s13_s12  }
   0x2   : > { %p138_p1 = scmp.lt.s32.totalorder %s367_s12, 3 }
   0x4   : > { %p139_p2 = pnand %p321_p0, %p138_p1 }
   0x5   : > { %v358_v0 = vld [vmem:[%s418_s1] sm:$0xff] (!%p139_p2)   ;;  %v369_v1 = vmov (!%p139_p2), 0.0   ;;  %v359_v2 = vld [vmem:[%s418_s1 + $0x8] sm:$0xff] (!%p139_p2)   ;;  %vm370_vm0 = vmmov (!%p139_p2), 0   ;;  %s322_s18 = sshll.u32 (!%p139_p2), %s317_s13, 1  ;;  %vm205_vm1 = vcmask (!%p139_p2), 261120  }
   0x6   : > { %142 = sbr.rel (%p139_p2) target bundleno = 236 (0xec), region = 32  ;;  %340 = vmatprep.subr.bf16.mxu0 (!%p139_p2), %v369_v1  ;;  %344 = vmatprep.mubr.msk.bf16.mxu0 (!%p139_p2), %vm370_vm0, %v369_v1  ;;  %p163_p3 = scmp.lt.s32.totalorder (!%p139_p2), %s322_s18, 3  ;;  %v326_v4 = vld [vmem:[%s419_s2] ss:$0 sm:$0xff] (!%p139_p2)  ;;  %vm258_vm2 = vcmask (!%p139_p2), 257024  }
   0x7   : > { %341 = vmatpush3.bf16.msra.mxu0 (!%p139_p2), %v358_v0 }
   0x8   : > { %342 = vmatprep.subr.bf16.mxu0 (!%p139_p2), %v369_v1 }
   0xb   : > { %343 = vmatpush3.bf16.msra.mxu0 (!%p139_p2), %v359_v2 }
   0xd   : > { %s422_s18 = smov (!%p163_p3, %s322_s18), 3 }
   0xe   : > { %s323_s19 = sshll.u32 %s422_s18, 2 }
   0xf   : > { %s166_s22 = scalar_lea.vmem %s417_s0, %s323_s19  ;;  %s172_s27 = scalar_lea.vmem %s420_s3, %s323_s19 }
  0x10   : > { %v360_v3 = vld [vmem:[%s166_s22] sm:$0xff]  }
  0x11   : > { %345 = vmatmul.mubr.msk.bf16.vlgmr.msra.gmra.mrb[0].mxu0 %vm205_vm1, %v360_v3 }
  0xe4   : > { %v243_v5 = vpop.f32.mrb[0].mxu0 }
  0xe5   : > { %v244_v6 = vadd.f32 %v326_v4, %v243_v5  ;;  %v346_v7 = vpop.f32.mrb[1].mxu0 }
  0xe6   : > { %v246_v8 = vpop.f32.mrb[2].mxu0 }
  0xe7   : > { %v335_v9 = vpack.c.bf16 %v244_v6, %v244_v6  ;;  %v247_v10 = vadd.f32 %v326_v4, %v246_v8  ;;  %v347_v11 = vpop.f32.mrb[3].mxu0 }
  0xe9   : > { %259 = vst.msk [vmem:[%s172_s27] sm:$0xf] %vm258_vm2, %v335_v9  ;;  %v336_v12 = vpack.c.bf16 %v247_v10, %v247_v10 }
  0xeb   : > { %260 = vst.msk [vmem:[%s172_s27 + $0x4] sm:$0xf] %vm258_vm2, %v336_v12 }
  0xec PF: > { %s13_s12 = sadd.s32 1, %s367_s12  }
  0xed   : > { %p10_p4 = scmp.ge.s32.totalorder %s13_s12, 4  }
  0xef   :  { %12 = sbr.rel (!%p10_p4) target bundleno = 1 (0x1), region = 62 }

// kernel: bottleneck_forward.4
= control target key start
LH: loop header
LB: loop body
LE: loop exit
PB: predicated region body
PF: predicated region fallthrough
CT: control target
= control target key end

     0   :  { %s1822_s27 = smov 0   ;;  %s2266_s0 = inlined_call_operand.vmem [shape: bf16[512,8], index: 0, kind: input, shape index: {}]   ;;  %s2267_s1 = inlined_call_operand.vmem [shape: bf16[8,2], index: 1, kind: input, shape index: {}]   ;;  %s2268_s2 = inlined_call_operand.vmem [shape: f32[1,2], index: 2, kind: input, shape index: {}]   ;;  %s2269_s3 = inlined_call_operand.vmem [shape: f32[1,2], index: 3, kind: input, shape index: {}]   ;;  %s2270_s4 = inlined_call_operand.vmem [shape: bf16[8,4], index: 4, kind: input, shape index: {}]   ;;  %s2271_s5 = inlined_call_operand.vmem [shape: f32[1,4], index: 5, kind: input, shape index: {}]   ;;  %s2272_s6 = inlined_call_operand.vmem [shape: f32[1,4], index: 6, kind: input, shape index: {}]   ;;  %s2273_s7 = inlined_call_operand.vmem [shape: bf16[512,2], index: 7, kind: output, shape index: {0}]   ;;  %s2274_s8 = inlined_call_operand.vmem [shape: bf16[512,4], index: 8, kind: output, shape index: {1}]  }
   0x1 LB: > { %s1448_s28 = sadd.s32 4294967295, %s1775_s27   ;;  %p1452_p0 = scmp.ge.s32.totalorder %s1775_s27, 1  ;;  %s1775_s27 = sphi %s1822_s27, %s19_s27  }
   0x2   : > { %p266_p1 = scmp.lt.s32.totalorder %s1775_s27, 3 }
   0x4   : > { %p267_p2 = pnand %p1452_p0, %p266_p1 }
   0x5   : > { %v356_v0 = vld [vmem:[%s2267_s1] sm:$0xf] (!%p267_p2)  ;;  %vm493_vm0 = vcmask (!%p267_p2), 1043456   ;;  %s1453_s11 = sshll.u32 (!%p267_p2), %s1448_s28, 5  ;;  %vm444_vm1 = vcmask (!%p267_p2), 64512   ;;  %vm889_vm2 = vcmask (!%p267_p2), 11264  }
   0x6   : > { %270 = sbr.rel (%p267_p2) target bundleno = 316 (0x13c), region = 48  ;;  %v922_v1 = vld [vmem:[%s2270_s4] sm:$0xf] (!%p267_p2)  ;;  %1743 = vmatprep.subr.msk.bf16.mxu0 (!%p267_p2), %vm493_vm0, %v356_v0  ;;  %v495_v2 = vsel (!%p267_p2), %vm493_vm0, %v356_v0, 0  ;;  %p306_p3 = scmp.lt.s32.totalorder (!%p267_p2), %s1453_s11, 63  ;;  %vm1325_vm3 = vcmask (!%p267_p2), 27648  }
   0x7   : > { %1744 = vmatprep.subr.msk.bf16.mxu1 (!%p267_p2), %vm493_vm0, %v922_v1  ;;  %v931_v3 = vsel (!%p267_p2), %vm493_vm0, %v922_v1, 0  ;;  %1676 = vmatpush3.bf16.msra.mxu0 (!%p267_p2), %v495_v2  ;;  %v1895_v20 = vld [vmem:[%s2268_s2] ss:$0 sm:$0xff] (!%p267_p2) }
   0x8   : > { %1710 = vmatpush3.bf16.msra.mxu1 (!%p267_p2), %v931_v3  ;;  %v1900_v21 = vld [vmem:[%s2271_s5] ss:$0 sm:$0xff] (!%p267_p2) }
   0x9   : > { %v1905_v23 = vld [vmem:[%s2269_s3] ss:$0 sm:$0xff] (!%p267_p2) }
   0xa   : > { %v1910_v25 = vld [vmem:[%s2272_s6] ss:$0 sm:$0xff] (!%p267_p2) }
   0xd   : > { %s2276_s11 = smov (!%p306_p3, %s1453_s11), 63 }
   0xe   : > { %s1836_s12 = sshll.u32 %s2276_s11, 2 }
   0xf   : > { %s1842_s15 = scalar_lea.vmem %s2266_s0, %s1836_s12  ;;  %s1924_s26 = scalar_lea.vmem %s2273_s7, %s1836_s12 }
  0x10   : > { %v1753_v4 = vld [vmem:[%s1842_s15] sm:$0xff]   ;;  %v1754_v5 = vld [vmem:[%s1842_s15 + $0x8] sm:$0xff]   ;;  %v1755_v6 = vld [vmem:[%s1842_s15 + $0x10] sm:$0xff]   ;;  %s1930_s30 = scalar_lea.vmem %s2274_s8, %s1836_s12 }
  0x11   : > { %1677 = vmatprep.mubr.msk.bf16.mxu0 %vm444_vm1, %v1753_v4  ;;  %1711 = vmatprep.mubr.msk.bf16.mxu1 %vm444_vm1, %v1753_v4  ;;  %v1756_v7 = vld [vmem:[%s1842_s15 + $0x18] sm:$0xff]   ;;  %v1757_v8 = vld [vmem:[%s1842_s15 + $0x20] sm:$0xff]   ;;  %v1758_v9 = vld [vmem:[%s1842_s15 + $0x28] sm:$0xff]  }
  0x12   : > { %1678 = vmatmul.mubr.msk.bf16.vlgmr.msra.gmra.mrb[0].mxu0 %vm444_vm1, %v1754_v5  ;;  %1712 = vmatmul.mubr.msk.bf16.vlgmr.msra.gmra.mrb[0].mxu1 %vm444_vm1, %v1754_v5  ;;  %v1759_v10 = vld [vmem:[%s1842_s15 + $0x30] sm:$0xff]   ;;  %v1760_v11 = vld [vmem:[%s1842_s15 + $0x38] sm:$0xff]   ;;  %v1761_v12 = vld [vmem:[%s1842_s15 + $0x40] sm:$0xff]  }
  0x13   : > { %1681 = vmatprep.mubr.msk.bf16.mxu0 %vm444_vm1, %v1755_v6  ;;  %1715 = vmatprep.mubr.msk.bf16.mxu1 %vm444_vm1, %v1755_v6  ;;  %v1762_v13 = vld [vmem:[%s1842_s15 + $0x48] sm:$0xff]   ;;  %v1763_v14 = vld [vmem:[%s1842_s15 + $0x50] sm:$0xff]   ;;  %v1764_v15 = vld [vmem:[%s1842_s15 + $0x58] sm:$0xff]  }
  0x14   : > { %v1765_v16 = vld [vmem:[%s1842_s15 + $0x60] sm:$0xff]   ;;  %v1766_v17 = vld [vmem:[%s1842_s15 + $0x68] sm:$0xff]   ;;  %v1767_v18 = vld [vmem:[%s1842_s15 + $0x70] sm:$0xff]  }
  0x15   : > { %v1768_v19 = vld [vmem:[%s1842_s15 + $0x78] sm:$0xff]  }
  0x1a   : > { %1682 = vmatmul.mubr.msk.bf16.gmra.mrb[4].mxu0 %vm444_vm1, %v1756_v7  ;;  %1716 = vmatmul.mubr.msk.bf16.gmra.mrb[4].mxu1 %vm444_vm1, %v1756_v7 }
  0x1b   : > { %1685 = vmatprep.mubr.msk.bf16.mxu0 %vm444_vm1, %v1757_v8  ;;  %1719 = vmatprep.mubr.msk.bf16.mxu1 %vm444_vm1, %v1757_v8 }
  0x22   : > { %1686 = vmatmul.mubr.msk.bf16.gmra.mrb[8].mxu0 %vm444_vm1, %v1758_v9  ;;  %1720 = vmatmul.mubr.msk.bf16.gmra.mrb[8].mxu1 %vm444_vm1, %v1758_v9 }
  0x23   : > { %1689 = vmatprep.mubr.msk.bf16.mxu0 %vm444_vm1, %v1759_v10  ;;  %1723 = vmatprep.mubr.msk.bf16.mxu1 %vm444_vm1, %v1759_v10 }
  0x2a   : > { %1690 = vmatmul.mubr.msk.bf16.gmra.mrb[12].mxu0 %vm444_vm1, %v1760_v11  ;;  %1724 = vmatmul.mubr.msk.bf16.gmra.mrb[12].mxu1 %vm444_vm1, %v1760_v11 }
  0x2b   : > { %1693 = vmatprep.mubr.msk.bf16.mxu0 %vm444_vm1, %v1761_v12  ;;  %1727 = vmatprep.mubr.msk.bf16.mxu1 %vm444_vm1, %v1761_v12 }
  0x32   : > { %1694 = vmatmul.mubr.msk.bf16.gmra.mrb[16].mxu0 %vm444_vm1, %v1762_v13  ;;  %1728 = vmatmul.mubr.msk.bf16.gmra.mrb[16].mxu1 %vm444_vm1, %v1762_v13 }
  0x33   : > { %1697 = vmatprep.mubr.msk.bf16.mxu0 %vm444_vm1, %v1763_v14  ;;  %1731 = vmatprep.mubr.msk.bf16.mxu1 %vm444_vm1, %v1763_v14 }
  0x3a   : > { %1698 = vmatmul.mubr.msk.bf16.gmra.mrb[20].mxu0 %vm444_vm1, %v1764_v15  ;;  %1732 = vmatmul.mubr.msk.bf16.gmra.mrb[20].mxu1 %vm444_vm1, %v1764_v15 }
  0x3b   : > { %1701 = vmatprep.mubr.msk.bf16.mxu0 %vm444_vm1, %v1765_v16  ;;  %1735 = vmatprep.mubr.msk.bf16.mxu1 %vm444_vm1, %v1765_v16 }
  0x42   : > { %1702 = vmatmul.mubr.msk.bf16.gmra.mrb[24].mxu0 %vm444_vm1, %v1766_v17  ;;  %1736 = vmatmul.mubr.msk.bf16.gmra.mrb[24].mxu1 %vm444_vm1, %v1766_v17 }
  0x43   : > { %1705 = vmatprep.mubr.msk.bf16.mxu0 %vm444_vm1, %v1767_v18  ;;  %1739 = vmatprep.mubr.msk.bf16.mxu1 %vm444_vm1, %v1767_v18 }
  0x4a   : > { %1706 = vmatmul.mubr.msk.bf16.gmra.mrb[28].mxu0 %vm444_vm1, %v1768_v19  ;;  %1740 = vmatmul.mubr.msk.bf16.gmra.mrb[28].mxu1 %vm444_vm1, %v1768_v19 }
  0xe5   : > { %v1679_v22 = vpop.f32.mrb[0].mxu0  ;;  %v1713_v24 = vpop.f32.mrb[0].mxu1 }
  0xe6   : > { %v540_v26 = vadd.f32 %v1679_v22, %v1895_v20  ;;  %v976_v27 = vadd.f32 %v1713_v24, %v1900_v21  ;;  %v531_v28 = vpop.f32.mrb[1].mxu0  ;;  %v967_v29 = vpop.f32.mrb[1].mxu1 }
  0xe7   : > { %v532_v30 = vadd.f32 %v1895_v20, %v531_v28  ;;  %v968_v31 = vadd.f32 %v1900_v21, %v967_v29  ;;  %v1680_v32 = vpop.f32.mrb[2].mxu0  ;;  %v1714_v33 = vpop.f32.mrb[2].mxu1 }
  0xe8   : > { %vm660_vm4 = vcmp.ge.f32.partialorder %v540_v26, 0.0  ;;  %v699_v34 = vmul.f32 %v1905_v23, %v540_v26  ;;  %vm1096_vm5 = vcmp.ge.f32.partialorder %v976_v27, 0.0  ;;  %v1135_v35 = vmul.f32 %v1910_v25, %v976_v27  ;;  %v534_v36 = vpop.f32.mrb[3].mxu0  ;;  %v970_v37 = vpop.f32.mrb[3].mxu1 }
  0xe9   : > { %vm658_vm6 = vcmp.ge.f32.partialorder %v532_v30, 0.0  ;;  %v697_v38 = vmul.f32 %v1905_v23, %v532_v30  ;;  %vm1094_vm7 = vcmp.ge.f32.partialorder %v968_v31, 0.0  ;;  %v1133_v39 = vmul.f32 %v1910_v25, %v968_v31 }
  0xea   : > { %v731_v40 = vsel %vm660_vm4, %v540_v26, %v699_v34  ;;  %v1167_v41 = vsel %vm1096_vm5, %v976_v27, %v1135_v35  ;;  %v543_v42 = vadd.f32 %v1680_v32, %v1895_v20  ;;  %v979_v43 = vadd.f32 %v1714_v33, %v1900_v21 }
  0xeb   : > { %v1579_v44 = vpack.c.bf16 %v731_v40, %v731_v40  ;;  %v1611_v45 = vpack.c.bf16 %v1167_v41, %v1167_v41  ;;  %v729_v46 = vsel %vm658_vm6, %v532_v30, %v697_v38  ;;  %v1165_v47 = vsel %vm1094_vm7, %v968_v31, %v1133_v39 }
  0xec   : > { %v1577_v48 = vpack.c.bf16 %v729_v46, %v729_v46  ;;  %v1609_v49 = vpack.c.bf16 %v1165_v47, %v1165_v47  ;;  %vm661_vm8 = vcmp.ge.f32.partialorder %v543_v42, 0.0  ;;  %v700_v50 = vmul.f32 %v1905_v23, %v543_v42 }
  0xed   : > { %892 = vst.msk [vmem:[%s1924_s26 + $0x8] sm:$0xf] %vm889_vm2, %v1579_v44  ;;  %vm1097_vm9 = vcmp.ge.f32.partialorder %v979_v43, 0.0  ;;  %v1136_v51 = vmul.f32 %v1910_v25, %v979_v43  ;;  %v535_v52 = vadd.f32 %v1895_v20, %v534_v36  ;;  %v971_v53 = vadd.f32 %v1900_v21, %v970_v37  ;;  %v1683_v54 = vpop.f32.mrb[4].mxu0  ;;  %v1717_v55 = vpop.f32.mrb[4].mxu1 }
  0xee   : > { %1328 = vst.msk [vmem:[%s1930_s30 + $0x8] sm:$0xf] %vm1325_vm3, %v1611_v45  ;;  %1326 = vst.msk [vmem:[%s1930_s30] sm:$0xf] %vm1325_vm3, %v1609_v49  ;;  %v732_v56 = vsel %vm661_vm8, %v543_v42, %v700_v50  ;;  %v556_v57 = vadd.f32 %v1683_v54, %v1895_v20  ;;  %v992_v58 = vadd.f32 %v1717_v55, %v1900_v21  ;;  %v547_v59 = vpop.f32.mrb[5].mxu0  ;;  %v983_v60 = vpop.f32.mrb[5].mxu1 }
  0xef   : > { %890 = vst.msk [vmem:[%s1924_s26] sm:$0xf] %vm889_vm2, %v1577_v48  ;;  %v1580_v61 = vpack.c.bf16 %v732_v56, %v732_v56  ;;  %v1168_v62 = vsel %vm1097_vm9, %v979_v43, %v1136_v51  ;;  %vm659_vm10 = vcmp.ge.f32.partialorder %v535_v52, 0.0  ;;  %v698_v63 = vmul.f32 %v1905_v23, %v535_v52  ;;  %v1684_v0 = vpop.f32.mrb[6].mxu0  ;;  %v1718_v1 = vpop.f32.mrb[6].mxu1 }
  0xf0   : > { %v1612_v2 = vpack.c.bf16 %v1168_v62, %v1168_v62  ;;  %vm1095_vm11 = vcmp.ge.f32.partialorder %v971_v53, 0.0  ;;  %v1134_v3 = vmul.f32 %v1910_v25, %v971_v53  ;;  %vm664_vm12 = vcmp.ge.f32.partialorder %v556_v57, 0.0  ;;  %v550_v4 = vpop.f32.mrb[7].mxu0  ;;  %v986_v5 = vpop.f32.mrb[7].mxu1 }
  0xf1   : > { %893 = vst.msk [vmem:[%s1924_s26 + $0xc] sm:$0xf] %vm889_vm2, %v1580_v61  ;;  %v730_v6 = vsel %vm659_vm10, %v535_v52, %v698_v63  ;;  %v703_v7 = vmul.f32 %v1905_v23, %v556_v57  ;;  %vm1100_vm13 = vcmp.ge.f32.partialorder %v992_v58, 0.0  ;;  %v1139_v8 = vmul.f32 %v1910_v25, %v992_v58 }
  0xf2   : > { %1329 = vst.msk [vmem:[%s1930_s30 + $0xc] sm:$0xf] %vm1325_vm3, %v1612_v2  ;;  %v1578_v9 = vpack.c.bf16 %v730_v6, %v730_v6  ;;  %v1166_v10 = vsel %vm1095_vm11, %v971_v53, %v1134_v3  ;;  %v548_v11 = vadd.f32 %v1895_v20, %v547_v59  ;;  %v984_v12 = vadd.f32 %v1900_v21, %v983_v60 }
  0xf3   : > { %v1610_v13 = vpack.c.bf16 %v1166_v10, %v1166_v10  ;;  %v735_v14 = vsel %vm664_vm12, %v556_v57, %v703_v7  ;;  %v1171_v15 = vsel %vm1100_vm13, %v992_v58, %v1139_v8  ;;  %v559_v16 = vadd.f32 %v1684_v0, %v1895_v20 }
  0xf4   : > { %891 = vst.msk [vmem:[%s1924_s26 + $0x4] sm:$0xf] %vm889_vm2, %v1578_v9  ;;  %v1583_v17 = vpack.c.bf16 %v735_v14, %v735_v14  ;;  %v1615_v18 = vpack.c.bf16 %v1171_v15, %v1171_v15  ;;  %vm662_vm14 = vcmp.ge.f32.partialorder %v548_v11, 0.0  ;;  %v701_v19 = vmul.f32 %v1905_v23, %v548_v11 }
  0xf5   : > { %1327 = vst.msk [vmem:[%s1930_s30 + $0x4] sm:$0xf] %vm1325_vm3, %v1610_v13  ;;  %vm1098_vm15 = vcmp.ge.f32.partialorder %v984_v12, 0.0  ;;  %v1137_v22 = vmul.f32 %v1910_v25, %v984_v12  ;;  %vm665_vm0 = vcmp.ge.f32.partialorder %v559_v16, 0.0  ;;  %v704_v24 = vmul.f32 %v1905_v23, %v559_v16  ;;  %v1687_v26 = vpop.f32.mrb[8].mxu0  ;;  %v1721_v27 = vpop.f32.mrb[8].mxu1 }
  0xf6   : > { %896 = vst.msk [vmem:[%s1924_s26 + $0x18] sm:$0xf] %vm889_vm2, %v1583_v17  ;;  %v733_v28 = vsel %vm662_vm14, %v548_v11, %v701_v19  ;;  %v995_v29 = vadd.f32 %v1718_v1, %v1900_v21  ;;  %v551_v30 = vadd.f32 %v1895_v20, %v550_v4  ;;  %v987_v31 = vadd.f32 %v1900_v21, %v986_v5  ;;  %v563_v32 = vpop.f32.mrb[9].mxu0  ;;  %v999_v33 = vpop.f32.mrb[9].mxu1 }
  0xf7   : > { %1332 = vst.msk [vmem:[%s1930_s30 + $0x18] sm:$0xf] %vm1325_vm3, %v1615_v18  ;;  %v1581_v34 = vpack.c.bf16 %v733_v28, %v733_v28  ;;  %v1169_v35 = vsel %vm1098_vm15, %v984_v12, %v1137_v22  ;;  %v736_v36 = vsel %vm665_vm0, %v559_v16, %v704_v24  ;;  %v572_v37 = vadd.f32 %v1687_v26, %v1895_v20  ;;  %v1688_v38 = vpop.f32.mrb[10].mxu0  ;;  %v1722_v39 = vpop.f32.mrb[10].mxu1 }
  0xf8   : > { %v1613_v40 = vpack.c.bf16 %v1169_v35, %v1169_v35  ;;  %v1584_v41 = vpack.c.bf16 %v736_v36, %v736_v36  ;;  %vm1101_vm1 = vcmp.ge.f32.partialorder %v995_v29, 0.0  ;;  %v1140_v42 = vmul.f32 %v1910_v25, %v995_v29  ;;  %v566_v43 = vpop.f32.mrb[11].mxu0  ;;  %v1002_v44 = vpop.f32.mrb[11].mxu1 }
  0xf9   : > { %894 = vst.msk [vmem:[%s1924_s26 + $0x10] sm:$0xf] %vm889_vm2, %v1581_v34  ;;  %vm663_vm4 = vcmp.ge.f32.partialorder %v551_v30, 0.0  ;;  %v702_v45 = vmul.f32 %v1905_v23, %v551_v30  ;;  %vm1099_vm5 = vcmp.ge.f32.partialorder %v987_v31, 0.0  ;;  %v1138_v46 = vmul.f32 %v1910_v25, %v987_v31 }
  0xfa   : > { %1330 = vst.msk [vmem:[%s1930_s30 + $0x10] sm:$0xf] %vm1325_vm3, %v1613_v40  ;;  %v1172_v47 = vsel %vm1101_vm1, %v995_v29, %v1140_v42  ;;  %vm668_vm6 = vcmp.ge.f32.partialorder %v572_v37, 0.0  ;;  %v707_v48 = vmul.f32 %v1905_v23, %v572_v37  ;;  %v1008_v49 = vadd.f32 %v1721_v27, %v1900_v21 }
  0xfb   : > { %897 = vst.msk [vmem:[%s1924_s26 + $0x1c] sm:$0xf] %vm889_vm2, %v1584_v41  ;;  %v1616_v50 = vpack.c.bf16 %v1172_v47, %v1172_v47  ;;  %v734_v51 = vsel %vm663_vm4, %v551_v30, %v702_v45  ;;  %v1170_v52 = vsel %vm1099_vm5, %v987_v31, %v1138_v46  ;;  %v564_v53 = vadd.f32 %v1895_v20, %v563_v32 }
  0xfc   : > { %v1582_v54 = vpack.c.bf16 %v734_v51, %v734_v51  ;;  %v1614_v55 = vpack.c.bf16 %v1170_v52, %v1170_v52  ;;  %v739_v56 = vsel %vm668_vm6, %v572_v37, %v707_v48  ;;  %vm1104_vm7 = vcmp.ge.f32.partialorder %v1008_v49, 0.0 }
  0xfd   : > { %1333 = vst.msk [vmem:[%s1930_s30 + $0x1c] sm:$0xf] %vm1325_vm3, %v1616_v50  ;;  %v1587_v57 = vpack.c.bf16 %v739_v56, %v739_v56  ;;  %v1143_v58 = vmul.f32 %v1910_v25, %v1008_v49  ;;  %vm666_vm8 = vcmp.ge.f32.partialorder %v564_v53, 0.0  ;;  %v705_v59 = vmul.f32 %v1905_v23, %v564_v53  ;;  %v1691_v60 = vpop.f32.mrb[12].mxu0  ;;  %v1725_v61 = vpop.f32.mrb[12].mxu1 }
  0xfe   : > { %895 = vst.msk [vmem:[%s1924_s26 + $0x14] sm:$0xf] %vm889_vm2, %v1582_v54  ;;  %v1000_v62 = vadd.f32 %v1900_v21, %v999_v33  ;;  %v575_v63 = vadd.f32 %v1688_v38, %v1895_v20  ;;  %v1011_v0 = vadd.f32 %v1722_v39, %v1900_v21  ;;  %v567_v1 = vadd.f32 %v1895_v20, %v566_v43  ;;  %v579_v2 = vpop.f32.mrb[13].mxu0  ;;  %v1015_v3 = vpop.f32.mrb[13].mxu1 }
  0xff   : > { %1331 = vst.msk [vmem:[%s1930_s30 + $0x14] sm:$0xf] %vm1325_vm3, %v1614_v55  ;;  %v1175_v4 = vsel %vm1104_vm7, %v1008_v49, %v1143_v58  ;;  %v737_v5 = vsel %vm666_vm8, %v564_v53, %v705_v59  ;;  %v1003_v6 = vadd.f32 %v1900_v21, %v1002_v44  ;;  %v588_v7 = vadd.f32 %v1691_v60, %v1895_v20  ;;  %v1692_v8 = vpop.f32.mrb[14].mxu0  ;;  %v1726_v9 = vpop.f32.mrb[14].mxu1 }
 0x100   : > { %900 = vst.msk [vmem:[%s1924_s26 + $0x28] sm:$0xf] %vm889_vm2, %v1587_v57  ;;  %v1619_v10 = vpack.c.bf16 %v1175_v4, %v1175_v4  ;;  %v1585_v11 = vpack.c.bf16 %v737_v5, %v737_v5  ;;  %vm1102_vm9 = vcmp.ge.f32.partialorder %v1000_v62, 0.0  ;;  %v1141_v12 = vmul.f32 %v1910_v25, %v1000_v62  ;;  %v582_v13 = vpop.f32.mrb[15].mxu0  ;;  %v2004_v14 = vpop.f32.mrb[15].mxu1 }
 0x101   : > { %vm669_vm10 = vcmp.ge.f32.partialorder %v575_v63, 0.0  ;;  %v708_v15 = vmul.f32 %v1905_v23, %v575_v63  ;;  %vm1105_vm11 = vcmp.ge.f32.partialorder %v1011_v0, 0.0  ;;  %v1144_v16 = vmul.f32 %v1910_v25, %v1011_v0 }
 0x102   : > { %1336 = vst.msk [vmem:[%s1930_s30 + $0x28] sm:$0xf] %vm1325_vm3, %v1619_v10  ;;  %v1173_v17 = vsel %vm1102_vm9, %v1000_v62, %v1141_v12  ;;  %vm667_vm12 = vcmp.ge.f32.partialorder %v567_v1, 0.0  ;;  %v706_v18 = vmul.f32 %v1905_v23, %v567_v1  ;;  %vm1103_vm13 = vcmp.ge.f32.partialorder %v1003_v6, 0.0 }
 0x103   : > { %898 = vst.msk [vmem:[%s1924_s26 + $0x20] sm:$0xf] %vm889_vm2, %v1585_v11  ;;  %v1617_v19 = vpack.c.bf16 %v1173_v17, %v1173_v17  ;;  %v740_v22 = vsel %vm669_vm10, %v575_v63, %v708_v15  ;;  %v1176_v24 = vsel %vm1105_vm11, %v1011_v0, %v1144_v16  ;;  %v1142_v26 = vmul.f32 %v1910_v25, %v1003_v6 }
 0x104   : > { %v1588_v27 = vpack.c.bf16 %v740_v22, %v740_v22  ;;  %v1620_v28 = vpack.c.bf16 %v1176_v24, %v1176_v24  ;;  %v738_v29 = vsel %vm667_vm12, %v567_v1, %v706_v18  ;;  %vm672_vm14 = vcmp.ge.f32.partialorder %v588_v7, 0.0 }
 0x105   : > { %1334 = vst.msk [vmem:[%s1930_s30 + $0x20] sm:$0xf] %vm1325_vm3, %v1617_v19  ;;  %v1586_v30 = vpack.c.bf16 %v738_v29, %v738_v29  ;;  %v1174_v31 = vsel %vm1103_vm13, %v1003_v6, %v1142_v26  ;;  %v711_v32 = vmul.f32 %v1905_v23, %v588_v7  ;;  %v1024_v33 = vadd.f32 %v1725_v61, %v1900_v21  ;;  %v1695_v34 = vpop.f32.mrb[16].mxu0  ;;  %v1729_v35 = vpop.f32.mrb[16].mxu1 }
 0x106   : > { %901 = vst.msk [vmem:[%s1924_s26 + $0x2c] sm:$0xf] %vm889_vm2, %v1588_v27  ;;  %v1618_v36 = vpack.c.bf16 %v1174_v31, %v1174_v31  ;;  %v580_v37 = vadd.f32 %v1895_v20, %v579_v2  ;;  %v1016_v38 = vadd.f32 %v1900_v21, %v1015_v3  ;;  %v591_v39 = vadd.f32 %v1692_v8, %v1895_v20  ;;  %v595_v40 = vpop.f32.mrb[17].mxu0  ;;  %v1031_v41 = vpop.f32.mrb[17].mxu1 }
 0x107   : > { %1337 = vst.msk [vmem:[%s1930_s30 + $0x2c] sm:$0xf] %vm1325_vm3, %v1620_v28  ;;  %v743_v42 = vsel %vm672_vm14, %v588_v7, %v711_v32  ;;  %vm1108_vm15 = vcmp.ge.f32.partialorder %v1024_v33, 0.0  ;;  %v1147_v43 = vmul.f32 %v1910_v25, %v1024_v33  ;;  %v1027_v44 = vadd.f32 %v1726_v9, %v1900_v21  ;;  %v2030_v45 = vpop.f32.mrb[18].mxu0  ;;  %v2032_v46 = vpop.f32.mrb[18].mxu1 }
 0x108   : > { %899 = vst.msk [vmem:[%s1924_s26 + $0x24] sm:$0xf] %vm889_vm2, %v1586_v30  ;;  %v1591_v47 = vpack.c.bf16 %v743_v42, %v743_v42  ;;  %vm670_vm0 = vcmp.ge.f32.partialorder %v580_v37, 0.0  ;;  %v709_v48 = vmul.f32 %v1905_v23, %v580_v37  ;;  %vm1106_vm1 = vcmp.ge.f32.partialorder %v1016_v38, 0.0  ;;  %v2037_v49 = vpop.f32.mrb[19].mxu0  ;;  %v2039_v50 = vpop.f32.mrb[19].mxu1 }
 0x109   : > { %1335 = vst.msk [vmem:[%s1930_s30 + $0x24] sm:$0xf] %vm1325_vm3, %v1618_v36  ;;  %v1179_v51 = vsel %vm1108_vm15, %v1024_v33, %v1147_v43  ;;  %v1145_v52 = vmul.f32 %v1910_v25, %v1016_v38  ;;  %vm673_vm4 = vcmp.ge.f32.partialorder %v591_v39, 0.0  ;;  %v712_v53 = vmul.f32 %v1905_v23, %v591_v39 }
 0x10a   : > { %904 = vst.msk [vmem:[%s1924_s26 + $0x38] sm:$0xf] %vm889_vm2, %v1591_v47  ;;  %v1623_v54 = vpack.c.bf16 %v1179_v51, %v1179_v51  ;;  %v741_v55 = vsel %vm670_vm0, %v580_v37, %v709_v48  ;;  %vm1109_vm5 = vcmp.ge.f32.partialorder %v1027_v44, 0.0  ;;  %v1148_v56 = vmul.f32 %v1910_v25, %v1027_v44 }
 0x10b   : > { %v1589_v57 = vpack.c.bf16 %v741_v55, %v741_v55  ;;  %v1177_v58 = vsel %vm1106_vm1, %v1016_v38, %v1145_v52  ;;  %v744_v59 = vsel %vm673_vm4, %v591_v39, %v712_v53  ;;  %v583_v60 = vadd.f32 %v1895_v20, %v582_v13 }
 0x10c   : > { %1340 = vst.msk [vmem:[%s1930_s30 + $0x38] sm:$0xf] %vm1325_vm3, %v1623_v54  ;;  %v1621_v61 = vpack.c.bf16 %v1177_v58, %v1177_v58  ;;  %v1592_v62 = vpack.c.bf16 %v744_v59, %v744_v59  ;;  %v1180_v63 = vsel %vm1109_vm5, %v1027_v44, %v1148_v56  ;;  %v1019_v0 = vadd.f32 %v1900_v21, %v2004_v14 }
 0x10d   : > { %902 = vst.msk [vmem:[%s1924_s26 + $0x30] sm:$0xf] %vm889_vm2, %v1589_v57  ;;  %v1624_v1 = vpack.c.bf16 %v1180_v63, %v1180_v63  ;;  %vm671_vm6 = vcmp.ge.f32.partialorder %v583_v60, 0.0  ;;  %v710_v2 = vmul.f32 %v1905_v23, %v583_v60  ;;  %v604_v3 = vadd.f32 %v1695_v34, %v1895_v20  ;;  %v1699_v4 = vpop.f32.mrb[20].mxu0  ;;  %v1733_v5 = vpop.f32.mrb[20].mxu1 }
 0x10e   : > { %1338 = vst.msk [vmem:[%s1930_s30 + $0x30] sm:$0xf] %vm1325_vm3, %v1621_v61  ;;  %vm1107_vm7 = vcmp.ge.f32.partialorder %v1019_v0, 0.0  ;;  %v1146_v6 = vmul.f32 %v1910_v25, %v1019_v0  ;;  %v1040_v7 = vadd.f32 %v1729_v35, %v1900_v21  ;;  %v596_v8 = vadd.f32 %v1895_v20, %v595_v40  ;;  %v611_v9 = vpop.f32.mrb[21].mxu0  ;;  %v2062_v10 = vpop.f32.mrb[21].mxu1 }
 0x10f   : > { %905 = vst.msk [vmem:[%s1924_s26 + $0x3c] sm:$0xf] %vm889_vm2, %v1592_v62  ;;  %v742_v11 = vsel %vm671_vm6, %v583_v60, %v710_v2  ;;  %vm676_vm8 = vcmp.ge.f32.partialorder %v604_v3, 0.0  ;;  %v715_v12 = vmul.f32 %v1905_v23, %v604_v3  ;;  %v1032_v13 = vadd.f32 %v1900_v21, %v1031_v41  ;;  %v2068_v14 = vpop.f32.mrb[22].mxu0  ;;  %v2070_v15 = vpop.f32.mrb[22].mxu1 }
 0x110   : > { %1341 = vst.msk [vmem:[%s1930_s30 + $0x3c] sm:$0xf] %vm1325_vm3, %v1624_v1  ;;  %v1590_v16 = vpack.c.bf16 %v742_v11, %v742_v11  ;;  %v1178_v17 = vsel %vm1107_vm7, %v1019_v0, %v1146_v6  ;;  %vm1112_vm9 = vcmp.ge.f32.partialorder %v1040_v7, 0.0  ;;  %v1151_v18 = vmul.f32 %v1910_v25, %v1040_v7  ;;  %v2073_v19 = vpop.f32.mrb[23].mxu0  ;;  %v2075_v22 = vpop.f32.mrb[23].mxu1 }
 0x111   : > { %v1622_v24 = vpack.c.bf16 %v1178_v17, %v1178_v17  ;;  %v747_v26 = vsel %vm676_vm8, %v604_v3, %v715_v12  ;;  %vm674_vm10 = vcmp.ge.f32.partialorder %v596_v8, 0.0  ;;  %v713_v27 = vmul.f32 %v1905_v23, %v596_v8 }
 0x112   : > { %903 = vst.msk [vmem:[%s1924_s26 + $0x34] sm:$0xf] %vm889_vm2, %v1590_v16  ;;  %v1595_v28 = vpack.c.bf16 %v747_v26, %v747_v26  ;;  %v1183_v29 = vsel %vm1112_vm9, %v1040_v7, %v1151_v18  ;;  %vm1110_vm11 = vcmp.ge.f32.partialorder %v1032_v13, 0.0  ;;  %v1149_v30 = vmul.f32 %v1910_v25, %v1032_v13 }
 0x113   : > { %1339 = vst.msk [vmem:[%s1930_s30 + $0x34] sm:$0xf] %vm1325_vm3, %v1622_v24  ;;  %v1627_v31 = vpack.c.bf16 %v1183_v29, %v1183_v29  ;;  %v745_v32 = vsel %vm674_vm10, %v596_v8, %v713_v27  ;;  %v607_v33 = vadd.f32 %v2030_v45, %v1895_v20  ;;  %v1043_v34 = vadd.f32 %v2032_v46, %v1900_v21 }
 0x114   : > { %908 = vst.msk [vmem:[%s1924_s26 + $0x48] sm:$0xf] %vm889_vm2, %v1595_v28  ;;  %v1593_v35 = vpack.c.bf16 %v745_v32, %v745_v32  ;;  %v1181_v36 = vsel %vm1110_vm11, %v1032_v13, %v1149_v30  ;;  %v599_v37 = vadd.f32 %v1895_v20, %v2037_v49  ;;  %v1035_v38 = vadd.f32 %v1900_v21, %v2039_v50 }
 0x115   : > { %1344 = vst.msk [vmem:[%s1930_s30 + $0x48] sm:$0xf] %vm1325_vm3, %v1627_v31  ;;  %v1625_v39 = vpack.c.bf16 %v1181_v36, %v1181_v36  ;;  %vm677_vm12 = vcmp.ge.f32.partialorder %v607_v33, 0.0  ;;  %v716_v40 = vmul.f32 %v1905_v23, %v607_v33  ;;  %vm1113_vm13 = vcmp.ge.f32.partialorder %v1043_v34, 0.0  ;;  %v2096_v41 = vpop.f32.mrb[24].mxu0  ;;  %v2098_v42 = vpop.f32.mrb[24].mxu1 }
 0x116   : > { %906 = vst.msk [vmem:[%s1924_s26 + $0x40] sm:$0xf] %vm889_vm2, %v1593_v35  ;;  %v1152_v43 = vmul.f32 %v1910_v25, %v1043_v34  ;;  %vm675_vm14 = vcmp.ge.f32.partialorder %v599_v37, 0.0  ;;  %v714_v44 = vmul.f32 %v1905_v23, %v599_v37  ;;  %vm1111_vm15 = vcmp.ge.f32.partialorder %v1035_v38, 0.0  ;;  %v2104_v45 = vpop.f32.mrb[25].mxu0  ;;  %v2106_v46 = vpop.f32.mrb[25].mxu1 }
 0x117   : > { %1342 = vst.msk [vmem:[%s1930_s30 + $0x40] sm:$0xf] %vm1325_vm3, %v1625_v39  ;;  %v748_v47 = vsel %vm677_vm12, %v607_v33, %v716_v40  ;;  %v1150_v48 = vmul.f32 %v1910_v25, %v1035_v38  ;;  %v620_v49 = vadd.f32 %v1699_v4, %v1895_v20  ;;  %v1056_v50 = vadd.f32 %v1733_v5, %v1900_v21  ;;  %v2113_v51 = vpop.f32.mrb[26].mxu0  ;;  %v2115_v52 = vpop.f32.mrb[26].mxu1 }
 0x118   : > { %v1596_v53 = vpack.c.bf16 %v748_v47, %v748_v47  ;;  %v1184_v54 = vsel %vm1113_vm13, %v1043_v34, %v1152_v43  ;;  %v746_v55 = vsel %vm675_vm14, %v599_v37, %v714_v44  ;;  %v612_v56 = vadd.f32 %v1895_v20, %v611_v9  ;;  %v2119_v57 = vpop.f32.mrb[27].mxu0  ;;  %v2121_v58 = vpop.f32.mrb[27].mxu1 }
 0x119   : > { %v1628_v59 = vpack.c.bf16 %v1184_v54, %v1184_v54  ;;  %v1594_v60 = vpack.c.bf16 %v746_v55, %v746_v55  ;;  %v1182_v61 = vsel %vm1111_vm15, %v1035_v38, %v1150_v48  ;;  %vm680_vm0 = vcmp.ge.f32.partialorder %v620_v49, 0.0 }
 0x11a   : > { %909 = vst.msk [vmem:[%s1924_s26 + $0x4c] sm:$0xf] %vm889_vm2, %v1596_v53  ;;  %v1626_v62 = vpack.c.bf16 %v1182_v61, %v1182_v61  ;;  %v719_v63 = vmul.f32 %v1905_v23, %v620_v49  ;;  %vm1116_vm1 = vcmp.ge.f32.partialorder %v1056_v50, 0.0  ;;  %v1155_v0 = vmul.f32 %v1910_v25, %v1056_v50 }
 0x11b   : > { %1345 = vst.msk [vmem:[%s1930_s30 + $0x4c] sm:$0xf] %vm1325_vm3, %v1628_v59  ;;  %vm678_vm4 = vcmp.ge.f32.partialorder %v612_v56, 0.0  ;;  %v717_v1 = vmul.f32 %v1905_v23, %v612_v56  ;;  %v1048_v2 = vadd.f32 %v1900_v21, %v2062_v10  ;;  %v623_v3 = vadd.f32 %v2068_v14, %v1895_v20 }
 0x11c   : > { %907 = vst.msk [vmem:[%s1924_s26 + $0x44] sm:$0xf] %vm889_vm2, %v1594_v60  ;;  %v751_v4 = vsel %vm680_vm0, %v620_v49, %v719_v63  ;;  %v1187_v5 = vsel %vm1116_vm1, %v1056_v50, %v1155_v0  ;;  %v1059_v6 = vadd.f32 %v2070_v15, %v1900_v21  ;;  %v615_v7 = vadd.f32 %v1895_v20, %v2073_v19 }
 0x11d   : > { %1343 = vst.msk [vmem:[%s1930_s30 + $0x44] sm:$0xf] %vm1325_vm3, %v1626_v62  ;;  %v1599_v8 = vpack.c.bf16 %v751_v4, %v751_v4  ;;  %v1631_v9 = vpack.c.bf16 %v1187_v5, %v1187_v5  ;;  %v749_v11 = vsel %vm678_vm4, %v612_v56, %v717_v1  ;;  %vm1114_vm5 = vcmp.ge.f32.partialorder %v1048_v2, 0.0  ;;  %v2143_v10 = vpop.f32.mrb[28].mxu0  ;;  %v2145_v12 = vpop.f32.mrb[28].mxu1 }
 0x11e   : > { %v1597_v13 = vpack.c.bf16 %v749_v11, %v749_v11  ;;  %v1153_v14 = vmul.f32 %v1910_v25, %v1048_v2  ;;  %vm681_vm6 = vcmp.ge.f32.partialorder %v623_v3, 0.0  ;;  %v720_v16 = vmul.f32 %v1905_v23, %v623_v3  ;;  %v2149_v17 = vpop.f32.mrb[29].mxu0  ;;  %v2151_v15 = vpop.f32.mrb[29].mxu1 }
 0x11f   : > { %912 = vst.msk [vmem:[%s1924_s26 + $0x58] sm:$0xf] %vm889_vm2, %v1599_v8  ;;  %vm1117_vm7 = vcmp.ge.f32.partialorder %v1059_v6, 0.0  ;;  %v1156_v18 = vmul.f32 %v1910_v25, %v1059_v6  ;;  %vm679_vm8 = vcmp.ge.f32.partialorder %v615_v7, 0.0  ;;  %v718_v19 = vmul.f32 %v1905_v23, %v615_v7  ;;  %v2159_v24 = vpop.f32.mrb[30].mxu0  ;;  %v2161_v26 = vpop.f32.mrb[30].mxu1 }
 0x120   : > { %1348 = vst.msk [vmem:[%s1930_s30 + $0x58] sm:$0xf] %vm1325_vm3, %v1631_v9  ;;  %v1185_v27 = vsel %vm1114_vm5, %v1048_v2, %v1153_v14  ;;  %v752_v28 = vsel %vm681_vm6, %v623_v3, %v720_v16  ;;  %v1051_v29 = vadd.f32 %v1900_v21, %v2075_v22  ;;  %v636_v30 = vadd.f32 %v2096_v41, %v1895_v20  ;;  %v2170_v31 = vpop.f32.mrb[31].mxu0  ;;  %v2172_v32 = vpop.f32.mrb[31].mxu1 }
 0x121   : > { %910 = vst.msk [vmem:[%s1924_s26 + $0x50] sm:$0xf] %vm889_vm2, %v1597_v13  ;;  %v1629_v33 = vpack.c.bf16 %v1185_v27, %v1185_v27  ;;  %v1600_v34 = vpack.c.bf16 %v752_v28, %v752_v28  ;;  %v1188_v35 = vsel %vm1117_vm7, %v1059_v6, %v1156_v18  ;;  %v750_v36 = vsel %vm679_vm8, %v615_v7, %v718_v19 }
 0x122   : > { %v1632_v37 = vpack.c.bf16 %v1188_v35, %v1188_v35  ;;  %v1598_v38 = vpack.c.bf16 %v750_v36, %v750_v36  ;;  %vm1115_vm9 = vcmp.ge.f32.partialorder %v1051_v29, 0.0  ;;  %v1154_v39 = vmul.f32 %v1910_v25, %v1051_v29 }
 0x123   : > { %1346 = vst.msk [vmem:[%s1930_s30 + $0x50] sm:$0xf] %vm1325_vm3, %v1629_v33  ;;  %vm684_vm10 = vcmp.ge.f32.partialorder %v636_v30, 0.0  ;;  %v723_v22 = vmul.f32 %v1905_v23, %v636_v30  ;;  %v1072_v40 = vadd.f32 %v2098_v42, %v1900_v21  ;;  %v628_v41 = vadd.f32 %v1895_v20, %v2104_v45 }
 0x124   : > { %913 = vst.msk [vmem:[%s1924_s26 + $0x5c] sm:$0xf] %vm889_vm2, %v1600_v34  ;;  %911 = vst.msk [vmem:[%s1924_s26 + $0x54] sm:$0xf] %vm889_vm2, %v1598_v38  ;;  %v1186_v43 = vsel %vm1115_vm9, %v1051_v29, %v1154_v39  ;;  %v1064_v44 = vadd.f32 %v1900_v21, %v2106_v46  ;;  %v639_v47 = vadd.f32 %v2113_v51, %v1895_v20 }
 0x125   : > { %1349 = vst.msk [vmem:[%s1930_s30 + $0x5c] sm:$0xf] %vm1325_vm3, %v1632_v37  ;;  %v1075_v48 = vadd.f32 %v2115_v52, %v1900_v21  ;;  %v1630_v42 = vpack.c.bf16 %v1186_v43, %v1186_v43  ;;  %v755_v49 = vsel %vm684_vm10, %v636_v30, %v723_v22  ;;  %vm1120_vm11 = vcmp.ge.f32.partialorder %v1072_v40, 0.0 }
 0x126   : > { %v1159_v45 = vmul.f32 %v1910_v25, %v1072_v40  ;;  %v1603_v50 = vpack.c.bf16 %v755_v49, %v755_v49  ;;  %vm682_vm12 = vcmp.ge.f32.partialorder %v628_v41, 0.0  ;;  %v721_v53 = vmul.f32 %v1905_v23, %v628_v41 }
 0x127   : > { %vm1118_vm13 = vcmp.ge.f32.partialorder %v1064_v44, 0.0  ;;  %1347 = vst.msk [vmem:[%s1930_s30 + $0x54] sm:$0xf] %vm1325_vm3, %v1630_v42  ;;  %v1157_v54 = vmul.f32 %v1910_v25, %v1064_v44  ;;  %vm685_vm14 = vcmp.ge.f32.partialorder %v639_v47, 0.0  ;;  %v724_v51 = vmul.f32 %v1905_v23, %v639_v47 }
 0x128   : > { %v1191_v46 = vsel %vm1120_vm11, %v1072_v40, %v1159_v45  ;;  %916 = vst.msk [vmem:[%s1924_s26 + $0x68] sm:$0xf] %vm889_vm2, %v1603_v50  ;;  %v753_v55 = vsel %vm682_vm12, %v628_v41, %v721_v53  ;;  %vm1121_vm15 = vcmp.ge.f32.partialorder %v1075_v48, 0.0  ;;  %v1160_v56 = vmul.f32 %v1910_v25, %v1075_v48 }
 0x129   : > { %v1635_v52 = vpack.c.bf16 %v1191_v46, %v1191_v46  ;;  %v1601_v59 = vpack.c.bf16 %v753_v55, %v753_v55  ;;  %v1189_v60 = vsel %vm1118_vm13, %v1064_v44, %v1157_v54  ;;  %v756_v61 = vsel %vm685_vm14, %v639_v47, %v724_v51 }
 0x12a   : > { %v631_v62 = vadd.f32 %v1895_v20, %v2119_v57  ;;  %v1633_v63 = vpack.c.bf16 %v1189_v60, %v1189_v60  ;;  %v1604_v0 = vpack.c.bf16 %v756_v61, %v756_v61  ;;  %v1192_v1 = vsel %vm1121_vm15, %v1075_v48, %v1160_v56 }
 0x12b   : > { %1352 = vst.msk [vmem:[%s1930_s30 + $0x68] sm:$0xf] %vm1325_vm3, %v1635_v52  ;;  %v1067_v2 = vadd.f32 %v1900_v21, %v2121_v58  ;;  %v1636_v3 = vpack.c.bf16 %v1192_v1, %v1192_v1  ;;  %v652_v5 = vadd.f32 %v2143_v10, %v1895_v20  ;;  %v1088_v58 = vadd.f32 %v2145_v12, %v1900_v21 }
 0x12c   : > { %914 = vst.msk [vmem:[%s1924_s26 + $0x60] sm:$0xf] %vm889_vm2, %v1601_v59  ;;  %vm683_vm0 = vcmp.ge.f32.partialorder %v631_v62, 0.0  ;;  %v722_v4 = vmul.f32 %v1905_v23, %v631_v62  ;;  %917 = vst.msk [vmem:[%s1924_s26 + $0x6c] sm:$0xf] %vm889_vm2, %v1604_v0  ;;  %v644_v6 = vadd.f32 %v1895_v20, %v2149_v17  ;;  %v1080_v9 = vadd.f32 %v1900_v21, %v2151_v15 }
 0x12d   : > { %1350 = vst.msk [vmem:[%s1930_s30 + $0x60] sm:$0xf] %vm1325_vm3, %v1633_v63  ;;  %vm1119_vm1 = vcmp.ge.f32.partialorder %v1067_v2, 0.0  ;;  %v1158_v57 = vmul.f32 %v1910_v25, %v1067_v2  ;;  %1353 = vst.msk [vmem:[%s1930_s30 + $0x6c] sm:$0xf] %vm1325_vm3, %v1636_v3  ;;  %vm688_vm4 = vcmp.ge.f32.partialorder %v652_v5, 0.0  ;;  %v727_v8 = vmul.f32 %v1905_v23, %v652_v5 }
 0x12e   : > { %v754_v7 = vsel %vm683_vm0, %v631_v62, %v722_v4  ;;  %vm1124_vm5 = vcmp.ge.f32.partialorder %v1088_v58, 0.0  ;;  %v1163_v13 = vmul.f32 %v1910_v25, %v1088_v58  ;;  %vm686_vm6 = vcmp.ge.f32.partialorder %v644_v6, 0.0 }
 0x12f   : > { %v1602_v11 = vpack.c.bf16 %v754_v7, %v754_v7  ;;  %v1190_v10 = vsel %vm1119_vm1, %v1067_v2, %v1158_v57  ;;  %v759_v14 = vsel %vm688_vm4, %v652_v5, %v727_v8  ;;  %v725_v16 = vmul.f32 %v1905_v23, %v644_v6 }
 0x130   : > { %v1634_v12 = vpack.c.bf16 %v1190_v10, %v1190_v10  ;;  %v1607_v17 = vpack.c.bf16 %v759_v14, %v759_v14  ;;  %v1195_v18 = vsel %vm1124_vm5, %v1088_v58, %v1163_v13  ;;  %vm1122_vm7 = vcmp.ge.f32.partialorder %v1080_v9, 0.0 }
 0x131   : > { %915 = vst.msk [vmem:[%s1924_s26 + $0x64] sm:$0xf] %vm889_vm2, %v1602_v11  ;;  %v1161_v19 = vmul.f32 %v1910_v25, %v1080_v9  ;;  %v1639_v15 = vpack.c.bf16 %v1195_v18, %v1195_v18  ;;  %v757_v27 = vsel %vm686_vm6, %v644_v6, %v725_v16  ;;  %v655_v28 = vadd.f32 %v2159_v24, %v1895_v20 }
 0x132   : > { %1351 = vst.msk [vmem:[%s1930_s30 + $0x64] sm:$0xf] %vm1325_vm3, %v1634_v12  ;;  %v1091_v29 = vadd.f32 %v2161_v26, %v1900_v21  ;;  %v1605_v30 = vpack.c.bf16 %v757_v27, %v757_v27  ;;  %v647_v34 = vadd.f32 %v1895_v20, %v2170_v31  ;;  %v1083_v35 = vadd.f32 %v1900_v21, %v2172_v32 }
 0x133   : > { %920 = vst.msk [vmem:[%s1924_s26 + $0x78] sm:$0xf] %vm889_vm2, %v1607_v17  ;;  %v1193_v33 = vsel %vm1122_vm7, %v1080_v9, %v1161_v19  ;;  %vm689_vm8 = vcmp.ge.f32.partialorder %v655_v28, 0.0  ;;  %v728_v24 = vmul.f32 %v1905_v23, %v655_v28 }
 0x134   : > { %1356 = vst.msk [vmem:[%s1930_s30 + $0x78] sm:$0xf] %vm1325_vm3, %v1639_v15  ;;  %v1637_v36 = vpack.c.bf16 %v1193_v33, %v1193_v33  ;;  %vm1125_vm9 = vcmp.ge.f32.partialorder %v1091_v29, 0.0  ;;  %v1164_v26 = vmul.f32 %v1910_v25, %v1091_v29  ;;  %vm687_vm10 = vcmp.ge.f32.partialorder %v647_v34, 0.0 }
 0x135   : > { %918 = vst.msk [vmem:[%s1924_s26 + $0x70] sm:$0xf] %vm889_vm2, %v1605_v30  ;;  %v726_v20 = vmul.f32 %v1905_v23, %v647_v34  ;;  %vm1123_vm11 = vcmp.ge.f32.partialorder %v1083_v35, 0.0  ;;  %v760_v21 = vsel %vm689_vm8, %v655_v28, %v728_v24  ;;  %v1162_v31 = vmul.f32 %v1910_v25, %v1083_v35 }
 0x136   : > { %1354 = vst.msk [vmem:[%s1930_s30 + $0x70] sm:$0xf] %vm1325_vm3, %v1637_v36  ;;  %v1608_v32 = vpack.c.bf16 %v760_v21, %v760_v21  ;;  %v1196_v37 = vsel %vm1125_vm9, %v1091_v29, %v1164_v26 }
 0x137   : > { %v758_v38 = vsel %vm687_vm10, %v647_v34, %v726_v20  ;;  %v1640_v39 = vpack.c.bf16 %v1196_v37, %v1196_v37  ;;  %v1194_v40 = vsel %vm1123_vm11, %v1083_v35, %v1162_v31 }
 0x138   : > { %v1606_v22 = vpack.c.bf16 %v758_v38, %v758_v38  ;;  %921 = vst.msk [vmem:[%s1924_s26 + $0x7c] sm:$0xf] %vm889_vm2, %v1608_v32  ;;  %v1638_v41 = vpack.c.bf16 %v1194_v40, %v1194_v40 }
 0x139   : > { %1357 = vst.msk [vmem:[%s1930_s30 + $0x7c] sm:$0xf] %vm1325_vm3, %v1640_v39 }
 0x13a   : > { %919 = vst.msk [vmem:[%s1924_s26 + $0x74] sm:$0xf] %vm889_vm2, %v1606_v22 }
 0x13b   : > { %1355 = vst.msk [vmem:[%s1930_s30 + $0x74] sm:$0xf] %vm1325_vm3, %v1638_v41 }
 0x13c PF: > { %s19_s27 = sadd.s32 1, %s1775_s27  }
 0x13d   : > { %p16_p4 = scmp.ge.s32.totalorder %s19_s27, 4  }
 0x13f   :  { %18 = sbr.rel (!%p16_p4) target bundleno = 1 (0x1), region = 90 }

// kernel: bottleneck_forward.7
= control target key start
LH: loop header
LB: loop body
LE: loop exit
PB: predicated region body
PF: predicated region fallthrough
CT: control target
= control target key end

     0   :  { %s1264_s21 = smov 0   ;;  %s1712_s0 = inlined_call_operand.vmem [shape: bf16[512,2], index: 0, kind: input, shape index: {}]   ;;  %s1713_s1 = inlined_call_operand.vmem [shape: bf16[2,4], index: 1, kind: input, shape index: {}]   ;;  %s1714_s2 = inlined_call_operand.vmem [shape: f32[1,4], index: 2, kind: input, shape index: {}]   ;;  %s1715_s3 = inlined_call_operand.vmem [shape: f32[1,4], index: 3, kind: input, shape index: {}]   ;;  %s1716_s4 = inlined_call_operand.vmem [shape: bf16[512,4], index: 4, kind: input, shape index: {}]   ;;  %s1717_s5 = inlined_call_operand.vmem [shape: f32[1,4], index: 5, kind: input, shape index: {}]   ;;  %s1718_s6 = inlined_call_operand.vmem [shape: f32[512,4], index: 6, kind: output, shape index: {}]  }
   0x1 LB: > { %s1015_s22 = sadd.s32 4294967295, %s1227_s21   ;;  %p1019_p0 = scmp.ge.s32.totalorder %s1227_s21, 1  ;;  %s1227_s21 = sphi %s1264_s21, %s16_s21  }
   0x2   : > { %p224_p1 = scmp.lt.s32.totalorder %s1227_s21, 3 }
   0x4   : > { %p225_p2 = pnand %p1019_p0, %p224_p1 }
   0x5   : > { %v310_v0 = vld [vmem:[%s1713_s1] sm:$0x1] (!%p225_p2)  ;;  %vm447_vm0 = vcmask (!%p225_p2), 1040384   ;;  %s1020_s25 = sshll.u32 (!%p225_p2), %s1015_s22, 5  ;;  %vm398_vm1 = vcmask (!%p225_p2), 15360   ;;  %vm914_vm2 = vcmask (!%p225_p2), 31744  }
   0x6   : > { %228 = sbr.rel (%p225_p2) target bundleno = 301 (0x12d), region = 44  ;;  %1195 = vmatprep.subr.msk.bf16.mxu0 (!%p225_p2), %vm447_vm0, %v310_v0  ;;  %1196 = vmatprep.subr.msk.bf16.mxu1 (!%p225_p2), %vm447_vm0, %v310_v0  ;;  %v449_v1 = vsel (!%p225_p2), %vm447_vm0, %v310_v0, 0  ;;  %p260_p3 = scmp.lt.s32.totalorder (!%p225_p2), %s1020_s25, 63  ;;  %v1383_v46 = vld [vmem:[%s1714_s2] ss:$0 sm:$0xff] (!%p225_p2) }
   0x7   : > { %1160 = vmatpush3.bf16.msra.mxu0 (!%p225_p2), %v449_v1  ;;  %1194 = vmatpush3.bf16.msra.mxu1 (!%p225_p2), %v449_v1  ;;  %v1402_v58 = vld [vmem:[%s1715_s3] ss:$0 sm:$0xff] (!%p225_p2) }
   0xd   : > { %s1725_s25 = smov (!%p260_p3, %s1020_s25), 63 }
   0xe   : > { %s1021_s26 = sshll.u32 %s1725_s25, 2  ;;  %s1025_s13 = sshll.u32 %s1725_s25, 3 }
   0xf   : > { %s1283_s29 = scalar_lea.vmem %s1712_s0, %s1021_s26  ;;  %s1322_s8 = scalar_lea.vmem %s1716_s4, %s1021_s26 }
  0x10   : > { %v1205_v2 = vld [vmem:[%s1283_s29] sm:$0xff]   ;;  %v1207_v4 = vld [vmem:[%s1283_s29 + $0x8] sm:$0xff]   ;;  %v1209_v6 = vld [vmem:[%s1283_s29 + $0x10] sm:$0xff]   ;;  %s1439_s18 = scalar_lea.vmem %s1718_s6, %s1025_s13 }
  0x11   : > { %v1206_v3 = vld [vmem:[%s1283_s29 + $0x40] sm:$0xff]   ;;  %1161 = vmatprep.mubr.msk.bf16.mxu0 %vm398_vm1, %v1205_v2  ;;  %v1208_v5 = vld [vmem:[%s1283_s29 + $0x48] sm:$0xff]   ;;  %v1210_v7 = vld [vmem:[%s1283_s29 + $0x50] sm:$0xff]  }
  0x12   : > { %1177 = vmatprep.mubr.msk.bf16.mxu1 %vm398_vm1, %v1206_v3  ;;  %1162 = vmatmul.mubr.msk.bf16.vlgmr.msra.gmra.mrb[0].mxu0 %vm398_vm1, %v1207_v4  ;;  %v1211_v8 = vld [vmem:[%s1283_s29 + $0x18] sm:$0xff]   ;;  %v1213_v10 = vld [vmem:[%s1283_s29 + $0x20] sm:$0xff]   ;;  %v1215_v12 = vld [vmem:[%s1283_s29 + $0x28] sm:$0xff]  }
  0x13   : > { %1178 = vmatmul.mubr.msk.bf16.vlgmr.msra.gmra.mrb[0].mxu1 %vm398_vm1, %v1208_v5  ;;  %1165 = vmatprep.mubr.msk.bf16.mxu0 %vm398_vm1, %v1209_v6  ;;  %v1212_v9 = vld [vmem:[%s1283_s29 + $0x58] sm:$0xff]   ;;  %v1214_v11 = vld [vmem:[%s1283_s29 + $0x60] sm:$0xff]   ;;  %v1216_v13 = vld [vmem:[%s1283_s29 + $0x68] sm:$0xff]  }
  0x14   : > { %1181 = vmatprep.mubr.msk.bf16.mxu1 %vm398_vm1, %v1210_v7  ;;  %v1217_v14 = vld [vmem:[%s1283_s29 + $0x30] sm:$0xff]   ;;  %v1219_v16 = vld [vmem:[%s1283_s29 + $0x38] sm:$0xff]   ;;  %v1325_v18 = vld [vmem:[%s1322_s8 + $0x8] sm:$0xff]  }
  0x15   : > { %v1218_v15 = vld [vmem:[%s1283_s29 + $0x70] sm:$0xff]   ;;  %v1220_v17 = vld [vmem:[%s1283_s29 + $0x78] sm:$0xff]   ;;  %v1328_v19 = vld [vmem:[%s1322_s8 + $0x48] sm:$0xff]   ;;  %v1069_v24 = vunpack.c.l.bf16 %v1325_v18  ;;  %v1070_v30 = vunpack.c.h.bf16 %v1325_v18 }
  0x16   : > { %v1331_v20 = vld [vmem:[%s1322_s8] sm:$0xff]   ;;  %v1337_v22 = vld [vmem:[%s1322_s8 + $0x18] sm:$0xff]   ;;  %v1101_v25 = vunpack.c.l.bf16 %v1328_v19  ;;  %v1345_v26 = vld [vmem:[%s1322_s8 + $0x10] sm:$0xff]   ;;  %v1102_v31 = vunpack.c.h.bf16 %v1328_v19 }
  0x17   : > { %v1334_v21 = vld [vmem:[%s1322_s8 + $0x40] sm:$0xff]   ;;  %v1340_v23 = vld [vmem:[%s1322_s8 + $0x58] sm:$0xff]   ;;  %v1348_v27 = vld [vmem:[%s1322_s8 + $0x50] sm:$0xff]   ;;  %v1065_v28 = vunpack.c.l.bf16 %v1331_v20  ;;  %v1066_v34 = vunpack.c.h.bf16 %v1331_v20  ;;  %v1077_v36 = vunpack.c.l.bf16 %v1337_v22  ;;  %v1073_v40 = vunpack.c.l.bf16 %v1345_v26 }
  0x18   : > { %v1097_v29 = vunpack.c.l.bf16 %v1334_v21  ;;  %v1355_v32 = vld [vmem:[%s1322_s8 + $0x28] sm:$0xff]   ;;  %v1098_v35 = vunpack.c.h.bf16 %v1334_v21  ;;  %v1109_v37 = vunpack.c.l.bf16 %v1340_v23  ;;  %v1365_v38 = vld [vmem:[%s1322_s8 + $0x20] sm:$0xff]   ;;  %v1105_v41 = vunpack.c.l.bf16 %v1348_v27  ;;  %v1375_v44 = vld [vmem:[%s1322_s8 + $0x38] sm:$0xff]  }
  0x19   : > { %v1358_v33 = vld [vmem:[%s1322_s8 + $0x68] sm:$0xff]   ;;  %v1368_v39 = vld [vmem:[%s1322_s8 + $0x60] sm:$0xff]   ;;  %v1078_v42 = vunpack.c.h.bf16 %v1337_v22  ;;  %v1110_v43 = vunpack.c.h.bf16 %v1340_v23  ;;  %v1378_v45 = vld [vmem:[%s1322_s8 + $0x78] sm:$0xff]   ;;  %v1074_v47 = vunpack.c.h.bf16 %v1345_v26  ;;  %v1106_v48 = vunpack.c.h.bf16 %v1348_v27 }
  0x1a   : > { %1166 = vmatmul.mubr.msk.bf16.gmra.mrb[4].mxu0 %vm398_vm1, %v1211_v8  ;;  %v1085_v49 = vunpack.c.l.bf16 %v1355_v32  ;;  %v1117_v50 = vunpack.c.l.bf16 %v1358_v33  ;;  %v1390_v51 = vld [vmem:[%s1322_s8 + $0x30] sm:$0xff]   ;;  %v1081_v53 = vunpack.c.l.bf16 %v1365_v38  ;;  %v1113_v54 = vunpack.c.l.bf16 %v1368_v39 }
  0x1b   : > { %1182 = vmatmul.mubr.msk.bf16.gmra.mrb[4].mxu1 %vm398_vm1, %v1212_v9  ;;  %1169 = vmatprep.mubr.msk.bf16.mxu0 %vm398_vm1, %v1213_v10  ;;  %v1393_v52 = vld [vmem:[%s1322_s8 + $0x70] sm:$0xff]   ;;  %v1086_v55 = vunpack.c.h.bf16 %v1355_v32  ;;  %v1118_v56 = vunpack.c.h.bf16 %v1358_v33  ;;  %v1082_v59 = vunpack.c.h.bf16 %v1365_v38  ;;  %v1114_v60 = vunpack.c.h.bf16 %v1368_v39 }
  0x1c   : > { %1185 = vmatprep.mubr.msk.bf16.mxu1 %vm398_vm1, %v1214_v11  ;;  %v1093_v61 = vunpack.c.l.bf16 %v1375_v44  ;;  %v1125_v62 = vunpack.c.l.bf16 %v1378_v45 }
  0x22   : > { %1170 = vmatmul.mubr.msk.bf16.gmra.mrb[8].mxu0 %vm398_vm1, %v1215_v12 }
  0x23   : > { %1186 = vmatmul.mubr.msk.bf16.gmra.mrb[8].mxu1 %vm398_vm1, %v1216_v13  ;;  %1173 = vmatprep.mubr.msk.bf16.mxu0 %vm398_vm1, %v1217_v14 }
  0x24   : > { %1189 = vmatprep.mubr.msk.bf16.mxu1 %vm398_vm1, %v1218_v15 }
  0x2a   : > { %1174 = vmatmul.mubr.msk.bf16.gmra.mrb[12].mxu0 %vm398_vm1, %v1219_v16 }
  0x2b   : > { %1190 = vmatmul.mubr.msk.bf16.gmra.mrb[12].mxu1 %vm398_vm1, %v1220_v17 }
  0xe5   : > { %v1163_v57 = vpop.f32.mrb[0].mxu0 }
  0xe6   : > { %v494_v63 = vadd.f32 %v1163_v57, %v1383_v46  ;;  %v1179_v0 = vpop.f32.mrb[0].mxu1  ;;  %v485_v1 = vpop.f32.mrb[1].mxu0 }
  0xe7   : > { %v558_v5 = vadd.f32 %v1179_v0, %v1383_v46  ;;  %v486_v6 = vadd.f32 %v1383_v46, %v485_v1  ;;  %v549_v7 = vpop.f32.mrb[1].mxu1  ;;  %v1164_v8 = vpop.f32.mrb[2].mxu0  ;;  %v1425_v1 = vld [vmem:[%s1717_s5] ss:$0 sm:$0xff] }
  0xe8   : > { %vm614_vm3 = vcmp.ge.f32.partialorder %v494_v63, 0.0  ;;  %v653_v11 = vmul.f32 %v1402_v58, %v494_v63  ;;  %v550_v12 = vadd.f32 %v1383_v46, %v549_v7  ;;  %v497_v13 = vadd.f32 %v1164_v8, %v1383_v46  ;;  %v1180_v14 = vpop.f32.mrb[2].mxu1  ;;  %v488_v15 = vpop.f32.mrb[3].mxu0 }
  0xe9   : > { %vm630_vm4 = vcmp.ge.f32.partialorder %v558_v5, 0.0  ;;  %v669_v16 = vmul.f32 %v1402_v58, %v558_v5  ;;  %vm612_vm5 = vcmp.ge.f32.partialorder %v486_v6, 0.0  ;;  %v651_v17 = vmul.f32 %v1402_v58, %v486_v6  ;;  %v552_v57 = vpop.f32.mrb[3].mxu1 }
  0xea   : > { %v685_v0 = vsel %vm614_vm3, %v494_v63, %v653_v11  ;;  %vm628_vm6 = vcmp.ge.f32.partialorder %v550_v12, 0.0  ;;  %v667_v7 = vmul.f32 %v1402_v58, %v550_v12  ;;  %vm615_vm7 = vcmp.ge.f32.partialorder %v497_v13, 0.0 }
  0xeb   : > { %v781_v8 = vadd.f32 %v1069_v24, %v685_v0  ;;  %v701_v10 = vsel %vm630_vm4, %v558_v5, %v669_v16  ;;  %v683_v9 = vsel %vm612_vm5, %v486_v6, %v651_v17  ;;  %v654_v4 = vmul.f32 %v1402_v58, %v497_v13 }
  0xec   : > { %v797_v3 = vadd.f32 %v1101_v25, %v701_v10  ;;  %v779_v63 = vadd.f32 %v1065_v28, %v683_v9  ;;  %v699_v11 = vsel %vm628_vm6, %v550_v12, %v667_v7  ;;  %v561_v2 = vadd.f32 %v1180_v14, %v1383_v46 }
  0xed   : > { %vm813_vm8 = vcmp.ge.f32.partialorder %v781_v8, 0.0  ;;  %v852_v24 = vmul.f32 %v1425_v1, %v781_v8  ;;  %v795_v5 = vadd.f32 %v1097_v29, %v699_v11  ;;  %v686_v6 = vsel %vm615_vm7, %v497_v13, %v654_v4  ;;  %v1167_v25 = vpop.f32.mrb[4].mxu0 }
  0xee   : > { %vm829_vm9 = vcmp.ge.f32.partialorder %v797_v3, 0.0  ;;  %v868_v28 = vmul.f32 %v1425_v1, %v797_v3  ;;  %vm811_vm10 = vcmp.ge.f32.partialorder %v779_v63, 0.0  ;;  %v850_v9 = vmul.f32 %v1425_v1, %v779_v63  ;;  %v1183_v10 = vpop.f32.mrb[4].mxu1  ;;  %v501_v12 = vpop.f32.mrb[5].mxu0 }
  0xef   : > { %v884_v14 = vsel %vm813_vm8, %v781_v8, %v852_v24  ;;  %vm827_vm11 = vcmp.ge.f32.partialorder %v795_v5, 0.0  ;;  %v866_v16 = vmul.f32 %v1425_v1, %v795_v5  ;;  %v782_v17 = vadd.f32 %v1070_v30, %v686_v6  ;;  %v565_v29 = vpop.f32.mrb[5].mxu1  ;;  %v1449_v4 = vpop.f32.mrb[6].mxu0 }
  0xf0   : > { %917 = vst.msk [vmem:[%s1439_s18 + $0x10] sm:$0xff] %vm914_vm2, %v884_v14  ;;  %v900_v13 = vsel %vm829_vm9, %v797_v3, %v868_v28  ;;  %v882_v0 = vsel %vm811_vm10, %v779_v63, %v850_v9  ;;  %vm631_vm12 = vcmp.ge.f32.partialorder %v561_v2, 0.0  ;;  %v670_v7 = vmul.f32 %v1402_v58, %v561_v2  ;;  %v1454_v11 = vpop.f32.mrb[6].mxu1  ;;  %v1456_v8 = vpop.f32.mrb[7].mxu0 }
  0xf1   : > { %933 = vst.msk [vmem:[%s1439_s18 + $0x90] sm:$0xff] %vm914_vm2, %v900_v13  ;;  %915 = vst.msk [vmem:[%s1439_s18] sm:$0xff] %vm914_vm2, %v882_v0  ;;  %v898_v18 = vsel %vm827_vm11, %v795_v5, %v866_v16  ;;  %vm814_vm13 = vcmp.ge.f32.partialorder %v782_v17, 0.0  ;;  %v853_v30 = vmul.f32 %v1425_v1, %v782_v17  ;;  %v489_v24 = vadd.f32 %v1383_v46, %v488_v15  ;;  %v1464_v3 = vpop.f32.mrb[7].mxu1 }
  0xf2   : > { %931 = vst.msk [vmem:[%s1439_s18 + $0x80] sm:$0xff] %vm914_vm2, %v898_v18  ;;  %v702_v63 = vsel %vm631_vm12, %v561_v2, %v670_v7  ;;  %v553_v6 = vadd.f32 %v1383_v46, %v552_v57  ;;  %v510_v28 = vadd.f32 %v1167_v25, %v1383_v46  ;;  %v574_v9 = vadd.f32 %v1183_v10, %v1383_v46 }
  0xf3   : > { %v885_v14 = vsel %vm814_vm13, %v782_v17, %v853_v30  ;;  %v798_v5 = vadd.f32 %v1102_v31, %v702_v63  ;;  %vm613_vm14 = vcmp.ge.f32.partialorder %v489_v24, 0.0  ;;  %v652_v16 = vmul.f32 %v1402_v58, %v489_v24 }
  0xf4   : > { %918 = vst.msk [vmem:[%s1439_s18 + $0x18] sm:$0xff] %vm914_vm2, %v885_v14  ;;  %vm629_vm15 = vcmp.ge.f32.partialorder %v553_v6, 0.0  ;;  %v668_v15 = vmul.f32 %v1402_v58, %v553_v6  ;;  %vm618_vm0 = vcmp.ge.f32.partialorder %v510_v28, 0.0  ;;  %v657_v2 = vmul.f32 %v1402_v58, %v510_v28 }
  0xf5   : > { %vm830_vm1 = vcmp.ge.f32.partialorder %v798_v5, 0.0  ;;  %v869_v57 = vmul.f32 %v1425_v1, %v798_v5  ;;  %v684_v25 = vsel %vm613_vm14, %v489_v24, %v652_v16  ;;  %vm634_vm3 = vcmp.ge.f32.partialorder %v574_v9, 0.0  ;;  %v1479_v10 = vpop.f32.mrb[8].mxu0 }
  0xf6   : > { %v780_v19 = vadd.f32 %v1066_v34, %v684_v25  ;;  %v700_v31 = vsel %vm629_vm15, %v553_v6, %v668_v15  ;;  %v689_v17 = vsel %vm618_vm0, %v510_v28, %v657_v2  ;;  %v673_v13 = vmul.f32 %v1402_v58, %v574_v9  ;;  %v1484_v0 = vpop.f32.mrb[8].mxu1  ;;  %v1486_v7 = vpop.f32.mrb[9].mxu0 }
  0xf7   : > { %v901_v18 = vsel %vm830_vm1, %v798_v5, %v869_v57  ;;  %v796_v30 = vadd.f32 %v1098_v35, %v700_v31  ;;  %v785_v24 = vadd.f32 %v1077_v36, %v689_v17  ;;  %v502_v63 = vadd.f32 %v1383_v46, %v501_v12  ;;  %v1493_v14 = vpop.f32.mrb[9].mxu1  ;;  %v1495_v20 = vpop.f32.mrb[10].mxu0 }
  0xf8   : > { %934 = vst.msk [vmem:[%s1439_s18 + $0x98] sm:$0xff] %vm914_vm2, %v901_v18  ;;  %vm812_vm4 = vcmp.ge.f32.partialorder %v780_v19, 0.0  ;;  %v851_v34 = vmul.f32 %v1425_v1, %v780_v19  ;;  %v705_v6 = vsel %vm634_vm3, %v574_v9, %v673_v13  ;;  %v566_v21 = vadd.f32 %v1383_v46, %v565_v29  ;;  %v1502_v35 = vpop.f32.mrb[10].mxu1  ;;  %v1504_v36 = vpop.f32.mrb[11].mxu0 }
  0xf9   : > { %vm828_vm5 = vcmp.ge.f32.partialorder %v796_v30, 0.0  ;;  %v867_v12 = vmul.f32 %v1425_v1, %v796_v30  ;;  %vm817_vm6 = vcmp.ge.f32.partialorder %v785_v24, 0.0  ;;  %v856_v28 = vmul.f32 %v1425_v1, %v785_v24  ;;  %v1508_v5 = vpop.f32.mrb[11].mxu1 }
  0xfa   : > { %v883_v16 = vsel %vm812_vm4, %v780_v19, %v851_v34  ;;  %v801_v9 = vadd.f32 %v1109_v37, %v705_v6  ;;  %vm616_vm7 = vcmp.ge.f32.partialorder %v502_v63, 0.0  ;;  %v655_v29 = vmul.f32 %v1402_v58, %v502_v63 }
  0xfb   : > { %916 = vst.msk [vmem:[%s1439_s18 + $0x8] sm:$0xff] %vm914_vm2, %v883_v16  ;;  %v899_v15 = vsel %vm828_vm5, %v796_v30, %v867_v12  ;;  %v888_v2 = vsel %vm817_vm6, %v785_v24, %v856_v28  ;;  %vm632_vm8 = vcmp.ge.f32.partialorder %v566_v21, 0.0  ;;  %v671_v57 = vmul.f32 %v1402_v58, %v566_v21 }
  0xfc   : > { %932 = vst.msk [vmem:[%s1439_s18 + $0x88] sm:$0xff] %vm914_vm2, %v899_v15  ;;  %921 = vst.msk [vmem:[%s1439_s18 + $0x30] sm:$0xff] %vm914_vm2, %v888_v2  ;;  %vm833_vm9 = vcmp.ge.f32.partialorder %v801_v9, 0.0  ;;  %v872_v25 = vmul.f32 %v1425_v1, %v801_v9  ;;  %v687_v19 = vsel %vm616_vm7, %v502_v63, %v655_v29  ;;  %v513_v37 = vadd.f32 %v1449_v4, %v1383_v46 }
  0xfd   : > { %v783_v31 = vadd.f32 %v1073_v40, %v687_v19  ;;  %v703_v17 = vsel %vm632_vm8, %v566_v21, %v671_v57  ;;  %v577_v13 = vadd.f32 %v1454_v11, %v1383_v46  ;;  %v505_v18 = vadd.f32 %v1383_v46, %v1456_v8  ;;  %v1529_v30 = vpop.f32.mrb[12].mxu0 }
  0xfe   : > { %v904_v24 = vsel %vm833_vm9, %v801_v9, %v872_v25  ;;  %v799_v34 = vadd.f32 %v1105_v41, %v703_v17  ;;  %vm619_vm10 = vcmp.ge.f32.partialorder %v513_v37, 0.0  ;;  %v658_v63 = vmul.f32 %v1402_v58, %v513_v37  ;;  %v1534_v4 = vpop.f32.mrb[12].mxu1  ;;  %v1536_v6 = vpop.f32.mrb[13].mxu0 }
  0xff   : > { %937 = vst.msk [vmem:[%s1439_s18 + $0xb0] sm:$0xff] %vm914_vm2, %v904_v24  ;;  %vm815_vm11 = vcmp.ge.f32.partialorder %v783_v31, 0.0  ;;  %v854_v40 = vmul.f32 %v1425_v1, %v783_v31  ;;  %vm635_vm12 = vcmp.ge.f32.partialorder %v577_v13, 0.0  ;;  %v674_v11 = vmul.f32 %v1402_v58, %v577_v13  ;;  %v1542_v8 = vpop.f32.mrb[13].mxu1  ;;  %v1544_v21 = vpop.f32.mrb[14].mxu0 }
 0x100   : > { %vm831_vm13 = vcmp.ge.f32.partialorder %v799_v34, 0.0  ;;  %v870_v41 = vmul.f32 %v1425_v1, %v799_v34  ;;  %v690_v12 = vsel %vm619_vm10, %v513_v37, %v658_v63  ;;  %vm617_vm14 = vcmp.ge.f32.partialorder %v505_v18, 0.0  ;;  %v1547_v28 = vpop.f32.mrb[14].mxu1  ;;  %v1549_v16 = vpop.f32.mrb[15].mxu0 }
 0x101   : > { %v886_v9 = vsel %vm815_vm11, %v783_v31, %v854_v40  ;;  %v786_v29 = vadd.f32 %v1078_v42, %v690_v12  ;;  %v706_v15 = vsel %vm635_vm12, %v577_v13, %v674_v11  ;;  %v656_v2 = vmul.f32 %v1402_v58, %v505_v18  ;;  %v1554_v57 = vpop.f32.mrb[15].mxu1 }
 0x102   : > { %919 = vst.msk [vmem:[%s1439_s18 + $0x20] sm:$0xff] %vm914_vm2, %v886_v9  ;;  %v902_v25 = vsel %vm831_vm13, %v799_v34, %v870_v41  ;;  %v802_v19 = vadd.f32 %v1110_v43, %v706_v15  ;;  %v569_v37 = vadd.f32 %v1383_v46, %v1464_v3  ;;  %v526_v31 = vadd.f32 %v1479_v10, %v1383_v46 }
 0x103   : > { %935 = vst.msk [vmem:[%s1439_s18 + $0xa0] sm:$0xff] %vm914_vm2, %v902_v25  ;;  %vm818_vm15 = vcmp.ge.f32.partialorder %v786_v29, 0.0  ;;  %v857_v22 = vmul.f32 %v1425_v1, %v786_v29  ;;  %v688_v42 = vsel %vm617_vm14, %v505_v18, %v656_v2  ;;  %v590_v17 = vadd.f32 %v1484_v0, %v1383_v46 }
 0x104   : > { %vm834_vm0 = vcmp.ge.f32.partialorder %v802_v19, 0.0  ;;  %v873_v23 = vmul.f32 %v1425_v1, %v802_v19  ;;  %v784_v43 = vadd.f32 %v1074_v47, %v688_v42  ;;  %vm633_vm1 = vcmp.ge.f32.partialorder %v569_v37, 0.0 }
 0x105   : > { %v889_v3 = vsel %vm818_vm15, %v786_v29, %v857_v22  ;;  %v672_v10 = vmul.f32 %v1402_v58, %v569_v37  ;;  %vm622_vm3 = vcmp.ge.f32.partialorder %v526_v31, 0.0  ;;  %v661_v13 = vmul.f32 %v1402_v58, %v526_v31 }
 0x106   : > { %922 = vst.msk [vmem:[%s1439_s18 + $0x38] sm:$0xff] %vm914_vm2, %v889_v3  ;;  %v905_v18 = vsel %vm834_vm0, %v802_v19, %v873_v23  ;;  %vm816_vm4 = vcmp.ge.f32.partialorder %v784_v43, 0.0  ;;  %v855_v0 = vmul.f32 %v1425_v1, %v784_v43  ;;  %vm638_vm5 = vcmp.ge.f32.partialorder %v590_v17, 0.0 }
 0x107   : > { %938 = vst.msk [vmem:[%s1439_s18 + $0xb8] sm:$0xff] %vm914_vm2, %v905_v18  ;;  %v704_v24 = vsel %vm633_vm1, %v569_v37, %v672_v10  ;;  %v693_v26 = vsel %vm622_vm3, %v526_v31, %v661_v13  ;;  %v677_v47 = vmul.f32 %v1402_v58, %v590_v17  ;;  %v518_v34 = vadd.f32 %v1383_v46, %v1486_v7 }
 0x108   : > { %v887_v63 = vsel %vm816_vm4, %v784_v43, %v855_v0  ;;  %v800_v40 = vadd.f32 %v1106_v48, %v704_v24  ;;  %v789_v11 = vadd.f32 %v1085_v49, %v693_v26  ;;  %v582_v41 = vadd.f32 %v1383_v46, %v1493_v14 }
 0x109   : > { %920 = vst.msk [vmem:[%s1439_s18 + $0x28] sm:$0xff] %vm914_vm2, %v887_v63  ;;  %v709_v12 = vsel %vm638_vm5, %v590_v17, %v677_v47  ;;  %vm620_vm6 = vcmp.ge.f32.partialorder %v518_v34, 0.0  ;;  %v659_v9 = vmul.f32 %v1402_v58, %v518_v34  ;;  %v529_v7 = vadd.f32 %v1495_v20, %v1383_v46 }
 0x10a   : > { %vm832_vm7 = vcmp.ge.f32.partialorder %v800_v40, 0.0  ;;  %v871_v27 = vmul.f32 %v1425_v1, %v800_v40  ;;  %vm821_vm8 = vcmp.ge.f32.partialorder %v789_v11, 0.0  ;;  %v860_v48 = vmul.f32 %v1425_v1, %v789_v11 }
 0x10b   : > { %v805_v49 = vadd.f32 %v1117_v50, %v709_v12  ;;  %v691_v14 = vsel %vm620_vm6, %v518_v34, %v659_v9  ;;  %vm636_vm9 = vcmp.ge.f32.partialorder %v582_v41, 0.0  ;;  %v675_v29 = vmul.f32 %v1402_v58, %v582_v41 }
 0x10c   : > { %v903_v15 = vsel %vm832_vm7, %v800_v40, %v871_v27  ;;  %v892_v2 = vsel %vm821_vm8, %v789_v11, %v860_v48  ;;  %v787_v25 = vadd.f32 %v1081_v53, %v691_v14  ;;  %vm623_vm10 = vcmp.ge.f32.partialorder %v529_v7, 0.0 }
 0x10d   : > { %936 = vst.msk [vmem:[%s1439_s18 + $0xa8] sm:$0xff] %vm914_vm2, %v903_v15  ;;  %925 = vst.msk [vmem:[%s1439_s18 + $0x50] sm:$0xff] %vm914_vm2, %v892_v2  ;;  %vm837_vm11 = vcmp.ge.f32.partialorder %v805_v49, 0.0  ;;  %v876_v20 = vmul.f32 %v1425_v1, %v805_v49  ;;  %v707_v50 = vsel %vm636_vm9, %v582_v41, %v675_v29  ;;  %v662_v19 = vmul.f32 %v1402_v58, %v529_v7 }
 0x10e   : > { %vm819_vm12 = vcmp.ge.f32.partialorder %v787_v25, 0.0  ;;  %v858_v37 = vmul.f32 %v1425_v1, %v787_v25  ;;  %v803_v31 = vadd.f32 %v1113_v54, %v707_v50  ;;  %v593_v53 = vadd.f32 %v1502_v35, %v1383_v46 }
 0x10f   : > { %v908_v22 = vsel %vm837_vm11, %v805_v49, %v876_v20  ;;  %v694_v42 = vsel %vm623_vm10, %v529_v7, %v662_v19  ;;  %v521_v17 = vadd.f32 %v1383_v46, %v1504_v36  ;;  %v585_v23 = vadd.f32 %v1383_v46, %v1508_v5 }
 0x110   : > { %941 = vst.msk [vmem:[%s1439_s18 + $0xd0] sm:$0xff] %vm914_vm2, %v908_v22  ;;  %v890_v43 = vsel %vm819_vm12, %v787_v25, %v858_v37  ;;  %vm835_vm13 = vcmp.ge.f32.partialorder %v803_v31, 0.0  ;;  %v874_v3 = vmul.f32 %v1425_v1, %v803_v31  ;;  %v790_v54 = vadd.f32 %v1086_v55, %v694_v42 }
 0x111   : > { %923 = vst.msk [vmem:[%s1439_s18 + $0x40] sm:$0xff] %vm914_vm2, %v890_v43  ;;  %vm639_vm14 = vcmp.ge.f32.partialorder %v593_v53, 0.0  ;;  %v678_v35 = vmul.f32 %v1402_v58, %v593_v53  ;;  %vm621_vm15 = vcmp.ge.f32.partialorder %v521_v17, 0.0  ;;  %v660_v36 = vmul.f32 %v1402_v58, %v521_v17 }
 0x112   : > { %v906_v10 = vsel %vm835_vm13, %v803_v31, %v874_v3  ;;  %vm822_vm0 = vcmp.ge.f32.partialorder %v790_v54, 0.0  ;;  %v861_v5 = vmul.f32 %v1425_v1, %v790_v54  ;;  %vm637_vm1 = vcmp.ge.f32.partialorder %v585_v23, 0.0 }
 0x113   : > { %939 = vst.msk [vmem:[%s1439_s18 + $0xc0] sm:$0xff] %vm914_vm2, %v906_v10  ;;  %v710_v13 = vsel %vm639_vm14, %v593_v53, %v678_v35  ;;  %v692_v18 = vsel %vm621_vm15, %v521_v17, %v660_v36  ;;  %v676_v32 = vmul.f32 %v1402_v58, %v585_v23  ;;  %v542_v55 = vadd.f32 %v1529_v30, %v1383_v46 }
 0x114   : > { %v893_v0 = vsel %vm822_vm0, %v790_v54, %v861_v5  ;;  %v806_v24 = vadd.f32 %v1118_v56, %v710_v13  ;;  %v788_v26 = vadd.f32 %v1082_v59, %v692_v18  ;;  %v606_v47 = vadd.f32 %v1534_v4, %v1383_v46 }
 0x115   : > { %926 = vst.msk [vmem:[%s1439_s18 + $0x58] sm:$0xff] %vm914_vm2, %v893_v0  ;;  %v708_v34 = vsel %vm637_vm1, %v585_v23, %v676_v32  ;;  %vm626_vm3 = vcmp.ge.f32.partialorder %v542_v55, 0.0  ;;  %v665_v63 = vmul.f32 %v1402_v58, %v542_v55  ;;  %v534_v30 = vadd.f32 %v1383_v46, %v1536_v6 }
 0x116   : > { %vm838_vm4 = vcmp.ge.f32.partialorder %v806_v24, 0.0  ;;  %v877_v33 = vmul.f32 %v1425_v1, %v806_v24  ;;  %vm820_vm5 = vcmp.ge.f32.partialorder %v788_v26, 0.0  ;;  %v859_v38 = vmul.f32 %v1425_v1, %v788_v26 }
 0x117   : > { %v804_v56 = vadd.f32 %v1114_v60, %v708_v34  ;;  %v697_v59 = vsel %vm626_vm3, %v542_v55, %v665_v63  ;;  %vm642_vm6 = vcmp.ge.f32.partialorder %v606_v47, 0.0  ;;  %v681_v4 = vmul.f32 %v1402_v58, %v606_v47 }
 0x118   : > { %v909_v40 = vsel %vm838_vm4, %v806_v24, %v877_v33  ;;  %v891_v11 = vsel %vm820_vm5, %v788_v26, %v859_v38  ;;  %v793_v41 = vadd.f32 %v1093_v61, %v697_v59  ;;  %vm624_vm7 = vcmp.ge.f32.partialorder %v534_v30, 0.0 }
 0x119   : > { %942 = vst.msk [vmem:[%s1439_s18 + $0xd8] sm:$0xff] %vm914_vm2, %v909_v40  ;;  %924 = vst.msk [vmem:[%s1439_s18 + $0x48] sm:$0xff] %vm914_vm2, %v891_v11  ;;  %vm836_vm8 = vcmp.ge.f32.partialorder %v804_v56, 0.0  ;;  %v875_v6 = vmul.f32 %v1425_v1, %v804_v56  ;;  %v713_v39 = vsel %vm642_vm6, %v606_v47, %v681_v4  ;;  %v663_v60 = vmul.f32 %v1402_v58, %v534_v30 }
 0x11a   : > { %vm825_vm9 = vcmp.ge.f32.partialorder %v793_v41, 0.0  ;;  %v864_v12 = vmul.f32 %v1425_v1, %v793_v41  ;;  %v809_v9 = vadd.f32 %v1125_v62, %v713_v39  ;;  %v598_v61 = vadd.f32 %v1383_v46, %v1542_v8 }
 0x11b   : > { %v907_v7 = vsel %vm836_vm8, %v804_v56, %v875_v6  ;;  %v695_v27 = vsel %vm624_vm7, %v534_v30, %v663_v60  ;;  %v545_v48 = vadd.f32 %v1544_v21, %v1383_v46  ;;  %v609_v49 = vadd.f32 %v1547_v28, %v1383_v46 }
 0x11c   : > { %940 = vst.msk [vmem:[%s1439_s18 + $0xc8] sm:$0xff] %vm914_vm2, %v907_v7  ;;  %v896_v14 = vsel %vm825_vm9, %v793_v41, %v864_v12  ;;  %vm841_vm10 = vcmp.ge.f32.partialorder %v809_v9, 0.0  ;;  %v880_v29 = vmul.f32 %v1425_v1, %v809_v9  ;;  %v1719_v62 = vunpack.c.l.bf16 %v1390_v51 }
 0x11d   : > { %929 = vst.msk [vmem:[%s1439_s18 + $0x70] sm:$0xff] %vm914_vm2, %v896_v14  ;;  %vm640_vm11 = vcmp.ge.f32.partialorder %v598_v61, 0.0  ;;  %v679_v8 = vmul.f32 %v1402_v58, %v598_v61  ;;  %vm627_vm12 = vcmp.ge.f32.partialorder %v545_v48, 0.0  ;;  %v666_v21 = vmul.f32 %v1402_v58, %v545_v48 }
 0x11e   : > { %v791_v15 = vadd.f32 %v1719_v62, %v695_v27  ;;  %v912_v2 = vsel %vm841_vm10, %v809_v9, %v880_v29  ;;  %vm643_vm14 = vcmp.ge.f32.partialorder %v609_v49, 0.0  ;;  %v682_v50 = vmul.f32 %v1402_v58, %v609_v49 }
 0x11f   : > { %945 = vst.msk [vmem:[%s1439_s18 + $0xf0] sm:$0xff] %vm914_vm2, %v912_v2  ;;  %v711_v25 = vsel %vm640_vm11, %v598_v61, %v679_v8  ;;  %v698_v20 = vsel %vm627_vm12, %v545_v48, %v666_v21  ;;  %v537_v19 = vadd.f32 %v1383_v46, %v1549_v16  ;;  %v1720_v31 = vunpack.c.l.bf16 %v1393_v52 }
 0x120   : > { %vm823_vm13 = vcmp.ge.f32.partialorder %v791_v15, 0.0  ;;  %v862_v28 = vmul.f32 %v1425_v1, %v791_v15  ;;  %v1721_v22 = vunpack.c.h.bf16 %v1375_v44  ;;  %v601_v17 = vadd.f32 %v1383_v46, %v1554_v57 }
 0x121   : > { %v807_v53 = vadd.f32 %v1720_v31, %v711_v25  ;;  %v714_v23 = vsel %vm643_vm14, %v609_v49, %v682_v50  ;;  %vm625_vm15 = vcmp.ge.f32.partialorder %v537_v19, 0.0  ;;  %v664_v43 = vmul.f32 %v1402_v58, %v537_v19 }
 0x122   : > { %v894_v37 = vsel %vm823_vm13, %v791_v15, %v862_v28  ;;  %v794_v42 = vadd.f32 %v1721_v22, %v698_v20  ;;  %v1122_v16 = vunpack.c.h.bf16 %v1393_v52  ;;  %v1722_v54 = vunpack.c.h.bf16 %v1378_v45 }
 0x123   : > { %927 = vst.msk [vmem:[%s1439_s18 + $0x60] sm:$0xff] %vm914_vm2, %v894_v37  ;;  %vm839_vm0 = vcmp.ge.f32.partialorder %v807_v53, 0.0  ;;  %v878_v3 = vmul.f32 %v1425_v1, %v807_v53  ;;  %v696_v46 = vsel %vm625_vm15, %v537_v19, %v664_v43  ;;  %vm641_vm3 = vcmp.ge.f32.partialorder %v601_v17, 0.0 }
 0x124   : > { %vm826_vm1 = vcmp.ge.f32.partialorder %v794_v42, 0.0  ;;  %v865_v44 = vmul.f32 %v1425_v1, %v794_v42  ;;  %v810_v35 = vadd.f32 %v1722_v54, %v714_v23  ;;  %v680_v57 = vmul.f32 %v1402_v58, %v601_v17 }
 0x125   : > { %v910_v36 = vsel %vm839_vm0, %v807_v53, %v878_v3  ;;  %v1723_v5 = vunpack.c.h.bf16 %v1390_v51 }
 0x126   : > { %v897_v10 = vsel %vm826_vm1, %v794_v42, %v865_v44  ;;  %943 = vst.msk [vmem:[%s1439_s18 + $0xe0] sm:$0xff] %vm914_vm2, %v910_v36  ;;  %vm842_vm4 = vcmp.ge.f32.partialorder %v810_v35, 0.0  ;;  %v881_v45 = vmul.f32 %v1425_v1, %v810_v35  ;;  %v712_v13 = vsel %vm641_vm3, %v601_v17, %v680_v57 }
 0x127   : > { %v792_v52 = vadd.f32 %v1723_v5, %v696_v46  ;;  %930 = vst.msk [vmem:[%s1439_s18 + $0x78] sm:$0xff] %vm914_vm2, %v897_v10  ;;  %v808_v32 = vadd.f32 %v1122_v16, %v712_v13 }
 0x128   : > { %v913_v58 = vsel %vm842_vm4, %v810_v35, %v881_v45 }
 0x129   : > { %vm824_vm5 = vcmp.ge.f32.partialorder %v792_v52, 0.0  ;;  %v863_v18 = vmul.f32 %v1425_v1, %v792_v52  ;;  %946 = vst.msk [vmem:[%s1439_s18 + $0xf8] sm:$0xff] %vm914_vm2, %v913_v58  ;;  %vm840_vm6 = vcmp.ge.f32.partialorder %v808_v32, 0.0  ;;  %v879_v51 = vmul.f32 %v1425_v1, %v808_v32 }
 0x12b   : > { %v895_v55 = vsel %vm824_vm5, %v792_v52, %v863_v18  ;;  %v911_v0 = vsel %vm840_vm6, %v808_v32, %v879_v51 }
 0x12c   : > { %928 = vst.msk [vmem:[%s1439_s18 + $0x68] sm:$0xff] %vm914_vm2, %v895_v55  ;;  %944 = vst.msk [vmem:[%s1439_s18 + $0xe8] sm:$0xff] %vm914_vm2, %v911_v0 }
 0x12d PF: > { %s16_s21 = sadd.s32 1, %s1227_s21  }
 0x12e   : > { %p13_p4 = scmp.ge.s32.totalorder %s16_s21, 4  }
 0x130   :  { %15 = sbr.rel (!%p13_p4) target bundleno = 1 (0x1), region = 77 }

</bundles_post_ra>
